<compile_context>
chip_gen: v7x
topology: tpu7x:2x2x1
jax: 0.10.0
libtpu: 0.0.40
codegen_flags: <defaults>
</compile_context>

<pallas_src>
import math
import numpy as np
import jax
import jax.numpy as jnp
from jax import lax
from jax.experimental import pallas as pl
from jax.experimental.pallas import tpu as pltpu

# ---- static model / problem sizes ------------------------------------------
B, S = 2, 8            # batch, sequence length
N_TOK = B * S          # batch folded into rows
IN_SIZE = 16           # Embedder input feature size
D_MODEL = 32           # transformer width
HEADS = 4
D_K = D_MODEL // HEADS
D_FF = 2048            # FeedForward default d_ff
N_LAYERS = 2           # Encoder N
EPS = 1e-6             # Norm eps

# ---- packed-slab layouts ----------------------------------------------------
# Global f32 slab (width D_MODEL): embed W/b, tiled PE, cross-batch mask,
# final norm alpha/bias.
GLOB_ROWS = 64
G_EW, G_EB, G_PE, G_MASK, G_NA, G_NB = 0, 16, 24, 40, 56, 57

# Per-layer small-param f32 slab (width 128): fused Wqkv/bqkv, Wo/bo,
# norm_1/norm_2 params, fb2.
LS_ROWS, LS_COLS = 80, 128
L_WQKV, L_BQKV, L_WO, L_BO = 0, 32, 40, 72
L_A1, L_NB1, L_A2, L_NB2, L_FB2 = 73, 74, 75, 76, 77


# ---------------------------- norm helpers ----------------------------------
def _norm(x, alpha, bias):
    # Matches PyTorch `Norm`: unbiased std (n-1 divisor), eps added to std.
    mean = jnp.mean(x, axis=-1, keepdims=True)
    c = x - mean
    var = jnp.sum(c * c, axis=-1, keepdims=True) * (1.0 / (D_MODEL - 1))
    return alpha * c / (jnp.sqrt(var) + EPS) + bias


# ------------------------------ fused kernel ---------------------------------
def _encoder_kernel(x_ref, g_ref, lw_ref, fb1_ref, w1_ref, w2_ref, o_ref,
                    h_ref):
    layer = pl.program_id(0)

    # ---- layer 0 only: Embedder + PositionalEncoder into the h scratch -----
    @pl.when(layer == 0)
    def _embed():
        ew = g_ref[G_EW:G_EW + IN_SIZE, :]          # (IN_SIZE, D)
        eb = g_ref[G_EB:G_EB + 1, :]                # (1, D)
        pe = g_ref[G_PE:G_PE + N_TOK, :]            # (N, D)
        e = jnp.dot(x_ref[...], ew, preferred_element_type=jnp.float32) + eb
        h_ref[...] = e * math.sqrt(D_MODEL) + pe

    # ---- unpack this layer's small params from the packed slab --------------
    mask = g_ref[G_MASK:G_MASK + N_TOK, 0:N_TOK]    # (N, N) additive -1e30
    wqkv = lw_ref[L_WQKV:L_WQKV + D_MODEL, 0:3 * D_MODEL]   # (D, 3D)
    bqkv = lw_ref[L_BQKV:L_BQKV + 1, 0:3 * D_MODEL]         # (1, 3D)
    wo = lw_ref[L_WO:L_WO + D_MODEL, 0:D_MODEL]             # (D, D)
    bo = lw_ref[L_BO:L_BO + 1, 0:D_MODEL]
    a1 = lw_ref[L_A1:L_A1 + 1, 0:D_MODEL]
    nb1 = lw_ref[L_NB1:L_NB1 + 1, 0:D_MODEL]
    a2 = lw_ref[L_A2:L_A2 + 1, 0:D_MODEL]
    nb2 = lw_ref[L_NB2:L_NB2 + 1, 0:D_MODEL]
    fb2 = lw_ref[L_FB2:L_FB2 + 1, 0:D_MODEL]

    h = h_ref[...]                                  # (N, D)

    # ---- sublayer 1: x + MHA(norm_1(x)) -------------------------------------
    x2 = _norm(h, a1, nb1)
    qkv = jnp.dot(x2, wqkv, preferred_element_type=jnp.float32) + bqkv  # (N,3D)
    scale = 1.0 / math.sqrt(D_K)
    # Per-head attention via static lane slices (D_K = 8). These matmuls are
    # tiny on purpose; on v6e/v7x they could also be done on the VPU.
    heads_out = []
    for hh in range(HEADS):
        qh = qkv[:, hh * D_K:(hh + 1) * D_K]
        kh = qkv[:, D_MODEL + hh * D_K:D_MODEL + (hh + 1) * D_K]
        vh = qkv[:, 2 * D_MODEL + hh * D_K:2 * D_MODEL + (hh + 1) * D_K]
        sc = lax.dot_general(qh, kh, (((1,), (1,)), ((), ())),
                             preferred_element_type=jnp.float32) * scale + mask
        sc = sc - jnp.max(sc, axis=-1, keepdims=True)           # stable
        p = jnp.exp(sc)
        p = p * pl.reciprocal(jnp.sum(p, axis=-1, keepdims=True), approx=True)
        heads_out.append(jnp.dot(p, vh, preferred_element_type=jnp.float32))
    att = jnp.concatenate(heads_out, axis=-1)                   # (N, D)
    h = h + jnp.dot(att, wo, preferred_element_type=jnp.float32) + bo

    # ---- sublayer 2: x + FF(norm_2(x)); bf16 weights, f32 accumulate --------
    x2 = _norm(h, a2, nb2)
    h1 = jnp.dot(x2.astype(jnp.bfloat16), w1_ref[...],
                 preferred_element_type=jnp.float32) + fb1_ref[...]
    h1 = jnp.maximum(h1, 0.0)
    ff = jnp.dot(h1.astype(jnp.bfloat16), w2_ref[...],
                 preferred_element_type=jnp.float32) + fb2
    h = h + ff

    h_ref[...] = h

    # ---- last layer: final Norm + store -------------------------------------
    @pl.when(layer == N_LAYERS - 1)
    def _finalize():
        na = g_ref[G_NA:G_NA + 1, :]
        nb = g_ref[G_NB:G_NB + 1, :]
        o_ref[...] = _norm(h, na, nb)


# ------------------------------ host-side packing ----------------------------
def _make_batch_mask():
    # Additive mask forbidding attention across the folded-batch boundary.
    bid = np.repeat(np.arange(B), S)
    same = bid[:, None] == bid[None, :]
    return np.where(same, 0.0, -1e30).astype(np.float32)


def _pack_params(params):
    g = np.zeros((GLOB_ROWS, D_MODEL), np.float32)
    g[G_EW:G_EW + IN_SIZE, :] = np.asarray(params["embed_w"])
    g[G_EB, :] = np.asarray(params["embed_b"]).reshape(-1)
    g[G_PE:G_PE + N_TOK, :] = np.tile(np.asarray(params["pe"]), (B, 1))
    g[G_MASK:G_MASK + N_TOK, 0:N_TOK] = _make_batch_mask()
    g[G_NA, :] = np.asarray(params["norm_alpha"]).reshape(-1)
    g[G_NB, :] = np.asarray(params["norm_bias"]).reshape(-1)

    lw = np.zeros((N_LAYERS, LS_ROWS, LS_COLS), np.float32)
    for i, p in enumerate(params["layers"]):
        lw[i, L_WQKV:L_WQKV + D_MODEL, 0:3 * D_MODEL] = np.concatenate(
            [np.asarray(p["wq"]), np.asarray(p["wk"]), np.asarray(p["wv"])],
            axis=1)
        lw[i, L_BQKV, 0:3 * D_MODEL] = np.concatenate(
            [np.asarray(p["bq"]).reshape(-1), np.asarray(p["bk"]).reshape(-1),
             np.asarray(p["bv"]).reshape(-1)])
        lw[i, L_WO:L_WO + D_MODEL, 0:D_MODEL] = np.asarray(p["wo"])
        lw[i, L_BO, 0:D_MODEL] = np.asarray(p["bo"]).reshape(-1)
        lw[i, L_A1, 0:D_MODEL] = np.asarray(p["a1"]).reshape(-1)
        lw[i, L_NB1, 0:D_MODEL] = np.asarray(p["nb1"]).reshape(-1)
        lw[i, L_A2, 0:D_MODEL] = np.asarray(p["a2"]).reshape(-1)
        lw[i, L_NB2, 0:D_MODEL] = np.asarray(p["nb2"]).reshape(-1)
        lw[i, L_FB2, 0:D_MODEL] = np.asarray(p["fb2"]).reshape(-1)

    fb1 = jnp.stack([p["fb1"] for p in params["layers"]])   # (L, 1, D_FF) f32
    w1 = jnp.stack([p["w1"] for p in params["layers"]])     # (L, D, D_FF) bf16
    w2 = jnp.stack([p["w2"] for p in params["layers"]])     # (L, D_FF, D) bf16
    return jnp.asarray(g), jnp.asarray(lw), fb1, w1, w2


def _cost_estimate(args):
    per_layer = (2 * N_TOK * D_MODEL * 3 * D_MODEL            # fused qkv
                 + 2 * 2 * HEADS * N_TOK * N_TOK * D_K        # scores + PV
                 + 2 * N_TOK * D_MODEL * D_MODEL              # out proj
                 + 2 * 2 * N_TOK * D_MODEL * D_FF)            # feed-forward
    flops = 2 * N_TOK * IN_SIZE * D_MODEL + N_LAYERS * per_layer
    transcendentals = N_LAYERS * (HEADS * N_TOK * N_TOK + 2 * N_TOK) + N_TOK
    bytes_accessed = sum(int(a.size) * a.dtype.itemsize for a in args)
    bytes_accessed += N_TOK * D_MODEL * 4                     # output
    return pl.CostEstimate(flops=int(flops),
                           transcendentals=int(transcendentals),
                           bytes_accessed=int(bytes_accessed))


# --------------------------------- wrapper ------------------------------------
def encoder_forward(x, params):
    g, lw, fb1, w1, w2 = _pack_params(params)
    args = (x.reshape(N_TOK, IN_SIZE), g, lw, fb1, w1, w2)

    out = pl.pallas_call(
        _encoder_kernel,
        grid=(N_LAYERS,),
        in_specs=[
            pl.BlockSpec((N_TOK, IN_SIZE), lambda l: (0, 0)),
            pl.BlockSpec((GLOB_ROWS, D_MODEL), lambda l: (0, 0)),
            pl.BlockSpec((None, LS_ROWS, LS_COLS), lambda l: (l, 0, 0)),
            pl.BlockSpec((None, 1, D_FF), lambda l: (l, 0, 0)),
            pl.BlockSpec((None, D_MODEL, D_FF), lambda l: (l, 0, 0)),
            pl.BlockSpec((None, D_FF, D_MODEL), lambda l: (l, 0, 0)),
        ],
        out_specs=pl.BlockSpec((N_TOK, D_MODEL), lambda l: (0, 0)),
        out_shape=jax.ShapeDtypeStruct((N_TOK, D_MODEL), jnp.float32),
        scratch_shapes=[pltpu.VMEM((N_TOK, D_MODEL), jnp.float32)],
        compiler_params=pltpu.CompilerParams(
            dimension_semantics=("arbitrary",)),
        cost_estimate=_cost_estimate(args),
    )(*args)
    return out.reshape(B, S, D_MODEL)


# ------------------------- parameters / PE table -----------------------------
def _make_pe_table(max_seq_len, d_model):
    # Exactly reproduces the (idiosyncratic) loop in PositionalEncoder.__init__.
    pe = np.zeros((max_seq_len, d_model), dtype=np.float32)
    for pos in range(max_seq_len):
        for i in range(0, d_model, 2):
            pe[pos, i] = math.sin(pos / 10000 ** (2 * i / d_model))
            pe[pos, i + 1] = math.cos(pos / 10000 ** (2 * (i + 1) / d_model))
    return jnp.asarray(pe)


def init_params(key):
    def nrm(k, shape, scale=0.05, dtype=jnp.float32):
        return (scale * jax.random.normal(k, shape)).astype(dtype)

    keys = iter(jax.random.split(key, 8 + N_LAYERS * 16))
    params = {
        "embed_w": nrm(next(keys), (IN_SIZE, D_MODEL)),
        "embed_b": nrm(next(keys), (1, D_MODEL)),
        "pe": _make_pe_table(512, D_MODEL)[:S],
        "norm_alpha": jnp.ones((1, D_MODEL), jnp.float32),
        "norm_bias": jnp.zeros((1, D_MODEL), jnp.float32),
        "layers": [],
    }
    for _ in range(N_LAYERS):
        lp = {
            "a1": jnp.ones((1, D_MODEL), jnp.float32),
            "nb1": jnp.zeros((1, D_MODEL), jnp.float32),
            "a2": jnp.ones((1, D_MODEL), jnp.float32),
            "nb2": jnp.zeros((1, D_MODEL), jnp.float32),
            "wq": nrm(next(keys), (D_MODEL, D_MODEL)),
            "bq": nrm(next(keys), (1, D_MODEL)),
            "wk": nrm(next(keys), (D_MODEL, D_MODEL)),
            "bk": nrm(next(keys), (1, D_MODEL)),
            "wv": nrm(next(keys), (D_MODEL, D_MODEL)),
            "bv": nrm(next(keys), (1, D_MODEL)),
            "wo": nrm(next(keys), (D_MODEL, D_MODEL)),
            "bo": nrm(next(keys), (1, D_MODEL)),
            # Large FF weights stored in bf16 (streamed to MXU as bf16,
            # accumulated in f32); biases kept f32.
            "w1": nrm(next(keys), (D_MODEL, D_FF), dtype=jnp.bfloat16),
            "fb1": nrm(next(keys), (1, D_FF)),
            "w2": nrm(next(keys), (D_FF, D_MODEL), dtype=jnp.bfloat16),
            "fb2": nrm(next(keys), (1, D_MODEL)),
        }
        params["layers"].append(lp)
    return params


# --------------------------- pure-JAX reference ------------------------------
def _norm_ref(x, alpha, bias):
    mean = jnp.mean(x, axis=-1, keepdims=True)
    c = x - mean
    var = jnp.sum(c * c, axis=-1, keepdims=True) / (x.shape[-1] - 1)
    return alpha * c / (jnp.sqrt(var) + EPS) + bias


def reference_forward(x, params):
    h = x @ params["embed_w"] + params["embed_b"]
    h = h * math.sqrt(D_MODEL) + params["pe"][None]
    for p in params["layers"]:
        x2 = _norm_ref(h, p["a1"], p["nb1"])
        q = x2 @ p["wq"] + p["bq"]
        k = x2 @ p["wk"] + p["bk"]
        v = x2 @ p["wv"] + p["bv"]

        def split(t):
            return t.reshape(B, S, HEADS, D_K).transpose(0, 2, 1, 3)

        qh, kh, vh = split(q), split(k), split(v)
        sc = jnp.einsum("bhqd,bhkd->bhqk", qh, kh) / math.sqrt(D_K)
        pr = jax.nn.softmax(sc, axis=-1)
        att = jnp.einsum("bhqk,bhkd->bhqd", pr, vh)
        att = att.transpose(0, 2, 1, 3).reshape(B, S, D_MODEL)
        h = h + (att @ p["wo"] + p["bo"])

        x2 = _norm_ref(h, p["a2"], p["nb2"])
        w1 = p["w1"].astype(jnp.float32)
        w2 = p["w2"].astype(jnp.float32)
        h = h + (jnp.maximum(x2 @ w1 + p["fb1"], 0.0) @ w2 + p["fb2"])
    return _norm_ref(h, params["norm_alpha"], params["norm_bias"])


# ---------------------------------- main --------------------------------------
if __name__ == "__main__":
    key = jax.random.PRNGKey(0)
    k_x, k_p = jax.random.split(key)
    x = jax.random.normal(k_x, (B, S, IN_SIZE), dtype=jnp.float32)
    params = init_params(k_p)

    out = jax.block_until_ready(encoder_forward(x, params))
    ref = jax.block_until_ready(reference_forward(x, params))

    np.testing.assert_allclose(np.asarray(out), np.asarray(ref),
                               rtol=5e-2, atol=5e-2)
    assert out.shape == (B, S, D_MODEL)
    print("KERNEL_OK")
</pallas_src>

<mosaic_0001>
module attributes {stable_mosaic.version = 11 : i64} {
  func.func @_encoder_kernel(%arg0: i32, %arg1: memref<16x16xf32, #tpu.memory_space<vmem>>, %arg2: memref<64x32xf32, #tpu.memory_space<vmem>>, %arg3: memref<1x80x128xf32, #tpu.memory_space<vmem>>, %arg4: memref<1x1x2048xf32, #tpu.memory_space<vmem>>, %arg5: memref<1x32x2048xbf16, #tpu.memory_space<vmem>>, %arg6: memref<1x2048x32xbf16, #tpu.memory_space<vmem>>, %arg7: memref<16x32xf32, #tpu.memory_space<vmem>>, %arg8: memref<16x32xf32, #tpu.memory_space<vmem>>) attributes {dimension_semantics = [#tpu.dimension_semantics<arbitrary>], iteration_bounds = array<i64: 2>, scalar_prefetch = 0 : i64, scratch_operands = 1 : i64, tpu.core_type = #tpu.core_type<tc>, window_params = [{pipeline_mode = #tpu.pipeline_mode<synchronous>, transform_indices = @transform_0, window_bounds = array<i64: 16, 16>}, {pipeline_mode = #tpu.pipeline_mode<synchronous>, transform_indices = @transform_1, window_bounds = array<i64: 64, 32>}, {transform_indices = @transform_2, window_bounds = array<i64: 1, 80, 128>}, {transform_indices = @transform_3, window_bounds = array<i64: 1, 1, 2048>}, {transform_indices = @transform_4, window_bounds = array<i64: 1, 32, 2048>}, {transform_indices = @transform_5, window_bounds = array<i64: 1, 2048, 32>}, {pipeline_mode = #tpu.pipeline_mode<synchronous>, transform_indices = @transform_6, window_bounds = array<i64: 16, 32>}]} {
    %c0_i32 = arith.constant 0 : i32
    %0 = arith.cmpi eq, %arg0, %c0_i32 : i32
    %1 = arith.extui %0 : i1 to i32
    %c0_i32_0 = arith.constant 0 : i32
    %2 = arith.cmpi ne, %1, %c0_i32_0 : i32
    scf.if %2 {
      %c0_69 = arith.constant 0 : index
      %c0_70 = arith.constant 0 : index
      %164 = vector.load %arg2[%c0_69, %c0_70] : memref<64x32xf32, #tpu.memory_space<vmem>>, vector<16x32xf32>
      %c16 = arith.constant 16 : index
      %c0_71 = arith.constant 0 : index
      %165 = vector.load %arg2[%c16, %c0_71] : memref<64x32xf32, #tpu.memory_space<vmem>>, vector<1x32xf32>
      %c24 = arith.constant 24 : index
      %c0_72 = arith.constant 0 : index
      %166 = vector.load %arg2[%c24, %c0_72] : memref<64x32xf32, #tpu.memory_space<vmem>>, vector<16x32xf32>
      %c0_73 = arith.constant 0 : index
      %c0_74 = arith.constant 0 : index
      %167 = vector.load %arg1[%c0_73, %c0_74] : memref<16x16xf32, #tpu.memory_space<vmem>>, vector<16x16xf32>
      %cst_75 = arith.constant dense<0.000000e+00> : vector<16x32xf32>
      %168 = tpu.matmul %167, %164, %cst_75 {dimension_numbers = #tpu.dot_dimension_numbers<[1], [0], [0], [1], [0, 0, 1, 1], [], []>} : vector<16x16xf32>, vector<16x32xf32>, vector<16x32xf32> -> vector<16x32xf32>
      %169 = vector.broadcast %165 : vector<1x32xf32> to vector<16x32xf32>
      %170 = arith.addf %168, %169 : vector<16x32xf32>
      %cst_76 = arith.constant 5.65685415 : f32
      %171 = vector.broadcast %cst_76 : f32 to vector<16x32xf32>
      %172 = arith.mulf %170, %171 : vector<16x32xf32>
      %173 = arith.addf %172, %166 : vector<16x32xf32>
      %c0_77 = arith.constant 0 : index
      %c0_78 = arith.constant 0 : index
      %174 = vector.load %arg8[%c0_77, %c0_78] : memref<16x32xf32, #tpu.memory_space<vmem>>, vector<16x32xf32>
      tpu.vector_store %arg8[%c0_77, %c0_78], %173 {strides = array<i32>} : memref<16x32xf32, #tpu.memory_space<vmem>>, vector<16x32xf32>,
    } else {
    }
    %c40 = arith.constant 40 : index
    %c0 = arith.constant 0 : index
    %3 = vector.load %arg2[%c40, %c0] : memref<64x32xf32, #tpu.memory_space<vmem>>, vector<16x16xf32>
    %c0_1 = arith.constant 0 : index
    %c0_2 = arith.constant 0 : index
    %c0_3 = arith.constant 0 : index
    %4 = vector.load %arg3[%c0_1, %c0_2, %c0_3] : memref<1x80x128xf32, #tpu.memory_space<vmem>>, vector<1x32x96xf32>
    %5 = vector.shape_cast %4 : vector<1x32x96xf32> to vector<32x96xf32>
    %c0_4 = arith.constant 0 : index
    %c32 = arith.constant 32 : index
    %c0_5 = arith.constant 0 : index
    %6 = vector.load %arg3[%c0_4, %c32, %c0_5] : memref<1x80x128xf32, #tpu.memory_space<vmem>>, vector<1x1x96xf32>
    %7 = vector.shape_cast %6 : vector<1x1x96xf32> to vector<1x96xf32>
    %c0_6 = arith.constant 0 : index
    %c40_7 = arith.constant 40 : index
    %c0_8 = arith.constant 0 : index
    %8 = vector.load %arg3[%c0_6, %c40_7, %c0_8] : memref<1x80x128xf32, #tpu.memory_space<vmem>>, vector<1x32x32xf32>
    %9 = vector.shape_cast %8 : vector<1x32x32xf32> to vector<32x32xf32>
    %c0_9 = arith.constant 0 : index
    %c72 = arith.constant 72 : index
    %c0_10 = arith.constant 0 : index
    %10 = vector.load %arg3[%c0_9, %c72, %c0_10] : memref<1x80x128xf32, #tpu.memory_space<vmem>>, vector<1x1x32xf32>
    %11 = vector.shape_cast %10 : vector<1x1x32xf32> to vector<1x32xf32>
    %c0_11 = arith.constant 0 : index
    %c73 = arith.constant 73 : index
    %c0_12 = arith.constant 0 : index
    %12 = vector.load %arg3[%c0_11, %c73, %c0_12] : memref<1x80x128xf32, #tpu.memory_space<vmem>>, vector<1x1x32xf32>
    %13 = vector.shape_cast %12 : vector<1x1x32xf32> to vector<1x32xf32>
    %c0_13 = arith.constant 0 : index
    %c74 = arith.constant 74 : index
    %c0_14 = arith.constant 0 : index
    %14 = vector.load %arg3[%c0_13, %c74, %c0_14] : memref<1x80x128xf32, #tpu.memory_space<vmem>>, vector<1x1x32xf32>
    %15 = vector.shape_cast %14 : vector<1x1x32xf32> to vector<1x32xf32>
    %c0_15 = arith.constant 0 : index
    %c75 = arith.constant 75 : index
    %c0_16 = arith.constant 0 : index
    %16 = vector.load %arg3[%c0_15, %c75, %c0_16] : memref<1x80x128xf32, #tpu.memory_space<vmem>>, vector<1x1x32xf32>
    %17 = vector.shape_cast %16 : vector<1x1x32xf32> to vector<1x32xf32>
    %c0_17 = arith.constant 0 : index
    %c76 = arith.constant 76 : index
    %c0_18 = arith.constant 0 : index
    %18 = vector.load %arg3[%c0_17, %c76, %c0_18] : memref<1x80x128xf32, #tpu.memory_space<vmem>>, vector<1x1x32xf32>
    %19 = vector.shape_cast %18 : vector<1x1x32xf32> to vector<1x32xf32>
    %c0_19 = arith.constant 0 : index
    %c77 = arith.constant 77 : index
    %c0_20 = arith.constant 0 : index
    %20 = vector.load %arg3[%c0_19, %c77, %c0_20] : memref<1x80x128xf32, #tpu.memory_space<vmem>>, vector<1x1x32xf32>
    %21 = vector.shape_cast %20 : vector<1x1x32xf32> to vector<1x32xf32>
    %c0_21 = arith.constant 0 : index
    %c0_22 = arith.constant 0 : index
    %22 = vector.load %arg8[%c0_21, %c0_22] : memref<16x32xf32, #tpu.memory_space<vmem>>, vector<16x32xf32>
    %cst = arith.constant dense<0.000000e+00> : vector<16xf32>
    %23 = vector.multi_reduction <add>, %22, %cst [1] : vector<16x32xf32> to vector<16xf32>
    %24 = vector.shape_cast %23 : vector<16xf32> to vector<16x1xf32>
    %cst_23 = arith.constant 3.200000e+01 : f32
    %25 = vector.broadcast %cst_23 : f32 to vector<16x1xf32>
    %26 = arith.divf %24, %25 : vector<16x1xf32>
    %27 = vector.broadcast %26 : vector<16x1xf32> to vector<16x32xf32>
    %28 = arith.subf %22, %27 : vector<16x32xf32>
    %29 = arith.mulf %28, %28 : vector<16x32xf32>
    %cst_24 = arith.constant dense<0.000000e+00> : vector<16xf32>
    %30 = vector.multi_reduction <add>, %29, %cst_24 [1] : vector<16x32xf32> to vector<16xf32>
    %31 = vector.shape_cast %30 : vector<16xf32> to vector<16x1xf32>
    %cst_25 = arith.constant 0.0322580636 : f32
    %32 = vector.broadcast %cst_25 : f32 to vector<16x1xf32>
    %33 = arith.mulf %31, %32 : vector<16x1xf32>
    %34 = vector.broadcast %13 : vector<1x32xf32> to vector<16x32xf32>
    %35 = arith.mulf %34, %28 : vector<16x32xf32>
    %36 = math.sqrt %33 : vector<16x1xf32>
    %cst_26 = arith.constant 9.99999997E-7 : f32
    %37 = vector.broadcast %cst_26 : f32 to vector<16x1xf32>
    %38 = arith.addf %36, %37 : vector<16x1xf32>
    %39 = vector.broadcast %38 : vector<16x1xf32> to vector<16x32xf32>
    %40 = arith.divf %35, %39 : vector<16x32xf32>
    %41 = vector.broadcast %15 : vector<1x32xf32> to vector<16x32xf32>
    %42 = arith.addf %40, %41 : vector<16x32xf32>
    %cst_27 = arith.constant dense<0.000000e+00> : vector<16x96xf32>
    %43 = tpu.matmul %42, %5, %cst_27 {dimension_numbers = #tpu.dot_dimension_numbers<[1], [0], [0], [1], [0, 0, 1, 1], [], []>} : vector<16x32xf32>, vector<32x96xf32>, vector<16x96xf32> -> vector<16x96xf32>
    %44 = vector.broadcast %7 : vector<1x96xf32> to vector<16x96xf32>
    %45 = arith.addf %43, %44 : vector<16x96xf32>
    %46 = vector.extract_strided_slice %45 {offsets = [0, 0], sizes = [16, 8], strides = [1, 1]} : vector<16x96xf32> to vector<16x8xf32>
    %47 = vector.extract_strided_slice %45 {offsets = [0, 32], sizes = [16, 8], strides = [1, 1]} : vector<16x96xf32> to vector<16x8xf32>
    %48 = vector.extract_strided_slice %45 {offsets = [0, 64], sizes = [16, 8], strides = [1, 1]} : vector<16x96xf32> to vector<16x8xf32>
    %cst_28 = arith.constant dense<0.000000e+00> : vector<16x16xf32>
    %49 = tpu.matmul %46, %47, %cst_28 {dimension_numbers = #tpu.dot_dimension_numbers<[1], [1], [0], [0], [0, 0, 1, 0], [], []>} : vector<16x8xf32>, vector<16x8xf32>, vector<16x16xf32> -> vector<16x16xf32>
    %cst_29 = arith.constant 0.353553385 : f32
    %50 = vector.broadcast %cst_29 : f32 to vector<16x16xf32>
    %51 = arith.mulf %49, %50 : vector<16x16xf32>
    %52 = arith.addf %51, %3 : vector<16x16xf32>
    %cst_30 = arith.constant dense<0xFF800000> : vector<16xf32>
    %53 = vector.multi_reduction <maximumf>, %52, %cst_30 [1] : vector<16x16xf32> to vector<16xf32>
    %54 = vector.shape_cast %53 : vector<16xf32> to vector<16x1xf32>
    %55 = vector.broadcast %54 : vector<16x1xf32> to vector<16x16xf32>
    %56 = arith.subf %52, %55 : vector<16x16xf32>
    %57 = math.exp %56 : vector<16x16xf32>
    %cst_31 = arith.constant dense<0.000000e+00> : vector<16xf32>
    %58 = vector.multi_reduction <add>, %57, %cst_31 [1] : vector<16x16xf32> to vector<16xf32>
    %59 = vector.shape_cast %58 : vector<16xf32> to vector<16x1xf32>
    %60 = tpu.reciprocal %59 {approx = true} : vector<16x1xf32> -> vector<16x1xf32>
    %61 = vector.broadcast %60 : vector<16x1xf32> to vector<16x16xf32>
    %62 = arith.mulf %57, %61 : vector<16x16xf32>
    %cst_32 = arith.constant dense<0.000000e+00> : vector<16x8xf32>
    %63 = tpu.matmul %62, %48, %cst_32 {dimension_numbers = #tpu.dot_dimension_numbers<[1], [0], [0], [1], [0, 0, 1, 1], [], []>} : vector<16x16xf32>, vector<16x8xf32>, vector<16x8xf32> -> vector<16x8xf32>
    %64 = vector.extract_strided_slice %45 {offsets = [0, 8], sizes = [16, 8], strides = [1, 1]} : vector<16x96xf32> to vector<16x8xf32>
    %65 = vector.extract_strided_slice %45 {offsets = [0, 40], sizes = [16, 8], strides = [1, 1]} : vector<16x96xf32> to vector<16x8xf32>
    %66 = vector.extract_strided_slice %45 {offsets = [0, 72], sizes = [16, 8], strides = [1, 1]} : vector<16x96xf32> to vector<16x8xf32>
    %cst_33 = arith.constant dense<0.000000e+00> : vector<16x16xf32>
    %67 = tpu.matmul %64, %65, %cst_33 {dimension_numbers = #tpu.dot_dimension_numbers<[1], [1], [0], [0], [0, 0, 1, 0], [], []>} : vector<16x8xf32>, vector<16x8xf32>, vector<16x16xf32> -> vector<16x16xf32>
    %cst_34 = arith.constant 0.353553385 : f32
    %68 = vector.broadcast %cst_34 : f32 to vector<16x16xf32>
    %69 = arith.mulf %67, %68 : vector<16x16xf32>
    %70 = arith.addf %69, %3 : vector<16x16xf32>
    %cst_35 = arith.constant dense<0xFF800000> : vector<16xf32>
    %71 = vector.multi_reduction <maximumf>, %70, %cst_35 [1] : vector<16x16xf32> to vector<16xf32>
    %72 = vector.shape_cast %71 : vector<16xf32> to vector<16x1xf32>
    %73 = vector.broadcast %72 : vector<16x1xf32> to vector<16x16xf32>
    %74 = arith.subf %70, %73 : vector<16x16xf32>
    %75 = math.exp %74 : vector<16x16xf32>
    %cst_36 = arith.constant dense<0.000000e+00> : vector<16xf32>
    %76 = vector.multi_reduction <add>, %75, %cst_36 [1] : vector<16x16xf32> to vector<16xf32>
    %77 = vector.shape_cast %76 : vector<16xf32> to vector<16x1xf32>
    %78 = tpu.reciprocal %77 {approx = true} : vector<16x1xf32> -> vector<16x1xf32>
    %79 = vector.broadcast %78 : vector<16x1xf32> to vector<16x16xf32>
    %80 = arith.mulf %75, %79 : vector<16x16xf32>
    %cst_37 = arith.constant dense<0.000000e+00> : vector<16x8xf32>
    %81 = tpu.matmul %80, %66, %cst_37 {dimension_numbers = #tpu.dot_dimension_numbers<[1], [0], [0], [1], [0, 0, 1, 1], [], []>} : vector<16x16xf32>, vector<16x8xf32>, vector<16x8xf32> -> vector<16x8xf32>
    %82 = vector.extract_strided_slice %45 {offsets = [0, 16], sizes = [16, 8], strides = [1, 1]} : vector<16x96xf32> to vector<16x8xf32>
    %83 = vector.extract_strided_slice %45 {offsets = [0, 48], sizes = [16, 8], strides = [1, 1]} : vector<16x96xf32> to vector<16x8xf32>
    %84 = vector.extract_strided_slice %45 {offsets = [0, 80], sizes = [16, 8], strides = [1, 1]} : vector<16x96xf32> to vector<16x8xf32>
    %cst_38 = arith.constant dense<0.000000e+00> : vector<16x16xf32>
    %85 = tpu.matmul %82, %83, %cst_38 {dimension_numbers = #tpu.dot_dimension_numbers<[1], [1], [0], [0], [0, 0, 1, 0], [], []>} : vector<16x8xf32>, vector<16x8xf32>, vector<16x16xf32> -> vector<16x16xf32>
    %cst_39 = arith.constant 0.353553385 : f32
    %86 = vector.broadcast %cst_39 : f32 to vector<16x16xf32>
    %87 = arith.mulf %85, %86 : vector<16x16xf32>
    %88 = arith.addf %87, %3 : vector<16x16xf32>
    %cst_40 = arith.constant dense<0xFF800000> : vector<16xf32>
    %89 = vector.multi_reduction <maximumf>, %88, %cst_40 [1] : vector<16x16xf32> to vector<16xf32>
    %90 = vector.shape_cast %89 : vector<16xf32> to vector<16x1xf32>
    %91 = vector.broadcast %90 : vector<16x1xf32> to vector<16x16xf32>
    %92 = arith.subf %88, %91 : vector<16x16xf32>
    %93 = math.exp %92 : vector<16x16xf32>
    %cst_41 = arith.constant dense<0.000000e+00> : vector<16xf32>
    %94 = vector.multi_reduction <add>, %93, %cst_41 [1] : vector<16x16xf32> to vector<16xf32>
    %95 = vector.shape_cast %94 : vector<16xf32> to vector<16x1xf32>
    %96 = tpu.reciprocal %95 {approx = true} : vector<16x1xf32> -> vector<16x1xf32>
    %97 = vector.broadcast %96 : vector<16x1xf32> to vector<16x16xf32>
    %98 = arith.mulf %93, %97 : vector<16x16xf32>
    %cst_42 = arith.constant dense<0.000000e+00> : vector<16x8xf32>
    %99 = tpu.matmul %98, %84, %cst_42 {dimension_numbers = #tpu.dot_dimension_numbers<[1], [0], [0], [1], [0, 0, 1, 1], [], []>} : vector<16x16xf32>, vector<16x8xf32>, vector<16x8xf32> -> vector<16x8xf32>
    %100 = vector.extract_strided_slice %45 {offsets = [0, 24], sizes = [16, 8], strides = [1, 1]} : vector<16x96xf32> to vector<16x8xf32>
    %101 = vector.extract_strided_slice %45 {offsets = [0, 56], sizes = [16, 8], strides = [1, 1]} : vector<16x96xf32> to vector<16x8xf32>
    %102 = vector.extract_strided_slice %45 {offsets = [0, 88], sizes = [16, 8], strides = [1, 1]} : vector<16x96xf32> to vector<16x8xf32>
    %cst_43 = arith.constant dense<0.000000e+00> : vector<16x16xf32>
    %103 = tpu.matmul %100, %101, %cst_43 {dimension_numbers = #tpu.dot_dimension_numbers<[1], [1], [0], [0], [0, 0, 1, 0], [], []>} : vector<16x8xf32>, vector<16x8xf32>, vector<16x16xf32> -> vector<16x16xf32>
    %cst_44 = arith.constant 0.353553385 : f32
    %104 = vector.broadcast %cst_44 : f32 to vector<16x16xf32>
    %105 = arith.mulf %103, %104 : vector<16x16xf32>
    %106 = arith.addf %105, %3 : vector<16x16xf32>
    %cst_45 = arith.constant dense<0xFF800000> : vector<16xf32>
    %107 = vector.multi_reduction <maximumf>, %106, %cst_45 [1] : vector<16x16xf32> to vector<16xf32>
    %108 = vector.shape_cast %107 : vector<16xf32> to vector<16x1xf32>
    %109 = vector.broadcast %108 : vector<16x1xf32> to vector<16x16xf32>
    %110 = arith.subf %106, %109 : vector<16x16xf32>
    %111 = math.exp %110 : vector<16x16xf32>
    %cst_46 = arith.constant dense<0.000000e+00> : vector<16xf32>
    %112 = vector.multi_reduction <add>, %111, %cst_46 [1] : vector<16x16xf32> to vector<16xf32>
    %113 = vector.shape_cast %112 : vector<16xf32> to vector<16x1xf32>
    %114 = tpu.reciprocal %113 {approx = true} : vector<16x1xf32> -> vector<16x1xf32>
    %115 = vector.broadcast %114 : vector<16x1xf32> to vector<16x16xf32>
    %116 = arith.mulf %111, %115 : vector<16x16xf32>
    %cst_47 = arith.constant dense<0.000000e+00> : vector<16x8xf32>
    %117 = tpu.matmul %116, %102, %cst_47 {dimension_numbers = #tpu.dot_dimension_numbers<[1], [0], [0], [1], [0, 0, 1, 1], [], []>} : vector<16x16xf32>, vector<16x8xf32>, vector<16x8xf32> -> vector<16x8xf32>
    %118 = tpu.concatenate %63, %81, %99, %117 in 1 : vector<16x8xf32>, vector<16x8xf32>, vector<16x8xf32>, vector<16x8xf32> -> vector<16x32xf32>
    %cst_48 = arith.constant dense<0.000000e+00> : vector<16x32xf32>
    %119 = tpu.matmul %118, %9, %cst_48 {dimension_numbers = #tpu.dot_dimension_numbers<[1], [0], [0], [1], [0, 0, 1, 1], [], []>} : vector<16x32xf32>, vector<32x32xf32>, vector<16x32xf32> -> vector<16x32xf32>
    %120 = arith.addf %22, %119 : vector<16x32xf32>
    %121 = vector.broadcast %11 : vector<1x32xf32> to vector<16x32xf32>
    %122 = arith.addf %120, %121 : vector<16x32xf32>
    %cst_49 = arith.constant dense<0.000000e+00> : vector<16xf32>
    %123 = vector.multi_reduction <add>, %122, %cst_49 [1] : vector<16x32xf32> to vector<16xf32>
    %124 = vector.shape_cast %123 : vector<16xf32> to vector<16x1xf32>
    %cst_50 = arith.constant 3.200000e+01 : f32
    %125 = vector.broadcast %cst_50 : f32 to vector<16x1xf32>
    %126 = arith.divf %124, %125 : vector<16x1xf32>
    %127 = vector.broadcast %126 : vector<16x1xf32> to vector<16x32xf32>
    %128 = arith.subf %122, %127 : vector<16x32xf32>
    %129 = arith.mulf %128, %128 : vector<16x32xf32>
    %cst_51 = arith.constant dense<0.000000e+00> : vector<16xf32>
    %130 = vector.multi_reduction <add>, %129, %cst_51 [1] : vector<16x32xf32> to vector<16xf32>
    %131 = vector.shape_cast %130 : vector<16xf32> to vector<16x1xf32>
    %cst_52 = arith.constant 0.0322580636 : f32
    %132 = vector.broadcast %cst_52 : f32 to vector<16x1xf32>
    %133 = arith.mulf %131, %132 : vector<16x1xf32>
    %134 = vector.broadcast %17 : vector<1x32xf32> to vector<16x32xf32>
    %135 = arith.mulf %134, %128 : vector<16x32xf32>
    %136 = math.sqrt %133 : vector<16x1xf32>
    %cst_53 = arith.constant 9.99999997E-7 : f32
    %137 = vector.broadcast %cst_53 : f32 to vector<16x1xf32>
    %138 = arith.addf %136, %137 : vector<16x1xf32>
    %139 = vector.broadcast %138 : vector<16x1xf32> to vector<16x32xf32>
    %140 = arith.divf %135, %139 : vector<16x32xf32>
    %141 = vector.broadcast %19 : vector<1x32xf32> to vector<16x32xf32>
    %142 = arith.addf %140, %141 : vector<16x32xf32>
    %143 = arith.truncf %142 : vector<16x32xf32> to vector<16x32xbf16>
    %c0_54 = arith.constant 0 : index
    %c0_55 = arith.constant 0 : index
    %c0_56 = arith.constant 0 : index
    %144 = vector.load %arg5[%c0_54, %c0_55, %c0_56] : memref<1x32x2048xbf16, #tpu.memory_space<vmem>>, vector<1x32x2048xbf16>
    %145 = vector.shape_cast %144 : vector<1x32x2048xbf16> to vector<32x2048xbf16>
    %cst_57 = arith.constant dense<0.000000e+00> : vector<16x2048xf32>
    %146 = tpu.matmul %143, %145, %cst_57 {dimension_numbers = #tpu.dot_dimension_numbers<[1], [0], [0], [1], [0, 0, 1, 1], [], []>} : vector<16x32xbf16>, vector<32x2048xbf16>, vector<16x2048xf32> -> vector<16x2048xf32>
    %c0_58 = arith.constant 0 : index
    %c0_59 = arith.constant 0 : index
    %c0_60 = arith.constant 0 : index
    %147 = vector.load %arg4[%c0_58, %c0_59, %c0_60] : memref<1x1x2048xf32, #tpu.memory_space<vmem>>, vector<1x1x2048xf32>
    %148 = vector.shape_cast %147 : vector<1x1x2048xf32> to vector<1x2048xf32>
    %149 = vector.broadcast %148 : vector<1x2048xf32> to vector<16x2048xf32>
    %150 = arith.addf %146, %149 : vector<16x2048xf32>
    %cst_61 = arith.constant 0.000000e+00 : f32
    %151 = vector.broadcast %cst_61 : f32 to vector<16x2048xf32>
    %152 = arith.maximumf %150, %151 : vector<16x2048xf32>
    %153 = arith.truncf %152 : vector<16x2048xf32> to vector<16x2048xbf16>
    %c0_62 = arith.constant 0 : index
    %c0_63 = arith.constant 0 : index
    %c0_64 = arith.constant 0 : index
    %154 = vector.load %arg6[%c0_62, %c0_63, %c0_64] : memref<1x2048x32xbf16, #tpu.memory_space<vmem>>, vector<1x2048x32xbf16>
    %155 = vector.shape_cast %154 : vector<1x2048x32xbf16> to vector<2048x32xbf16>
    %cst_65 = arith.constant dense<0.000000e+00> : vector<16x32xf32>
    %156 = tpu.matmul %153, %155, %cst_65 {dimension_numbers = #tpu.dot_dimension_numbers<[1], [0], [0], [1], [0, 0, 1, 1], [], []>} : vector<16x2048xbf16>, vector<2048x32xbf16>, vector<16x32xf32> -> vector<16x32xf32>
    %157 = vector.broadcast %21 : vector<1x32xf32> to vector<16x32xf32>
    %158 = arith.addf %156, %157 : vector<16x32xf32>
    %159 = arith.addf %122, %158 : vector<16x32xf32>
    %c0_66 = arith.constant 0 : index
    %c0_67 = arith.constant 0 : index
    %160 = vector.load %arg8[%c0_66, %c0_67] : memref<16x32xf32, #tpu.memory_space<vmem>>, vector<16x32xf32>
    tpu.vector_store %arg8[%c0_66, %c0_67], %159 {strides = array<i32>} : memref<16x32xf32, #tpu.memory_space<vmem>>, vector<16x32xf32>,
    %c1_i32 = arith.constant 1 : i32
    %161 = arith.cmpi eq, %arg0, %c1_i32 : i32
    %162 = arith.extui %161 : i1 to i32
    %c0_i32_68 = arith.constant 0 : i32
    %163 = arith.cmpi ne, %162, %c0_i32_68 : i32
    scf.if %163 {
      %c56 = arith.constant 56 : index
      %c0_69 = arith.constant 0 : index
      %164 = vector.load %arg2[%c56, %c0_69] : memref<64x32xf32, #tpu.memory_space<vmem>>, vector<1x32xf32>
      %c57 = arith.constant 57 : index
      %c0_70 = arith.constant 0 : index
      %165 = vector.load %arg2[%c57, %c0_70] : memref<64x32xf32, #tpu.memory_space<vmem>>, vector<1x32xf32>
      %cst_71 = arith.constant dense<0.000000e+00> : vector<16xf32>
      %166 = vector.multi_reduction <add>, %159, %cst_71 [1] : vector<16x32xf32> to vector<16xf32>
      %167 = vector.shape_cast %166 : vector<16xf32> to vector<16x1xf32>
      %cst_72 = arith.constant 3.200000e+01 : f32
      %168 = vector.broadcast %cst_72 : f32 to vector<16x1xf32>
      %169 = arith.divf %167, %168 : vector<16x1xf32>
      %170 = vector.broadcast %169 : vector<16x1xf32> to vector<16x32xf32>
      %171 = arith.subf %159, %170 : vector<16x32xf32>
      %172 = arith.mulf %171, %171 : vector<16x32xf32>
      %cst_73 = arith.constant dense<0.000000e+00> : vector<16xf32>
      %173 = vector.multi_reduction <add>, %172, %cst_73 [1] : vector<16x32xf32> to vector<16xf32>
      %174 = vector.shape_cast %173 : vector<16xf32> to vector<16x1xf32>
      %cst_74 = arith.constant 0.0322580636 : f32
      %175 = vector.broadcast %cst_74 : f32 to vector<16x1xf32>
      %176 = arith.mulf %174, %175 : vector<16x1xf32>
      %177 = vector.broadcast %164 : vector<1x32xf32> to vector<16x32xf32>
      %178 = arith.mulf %177, %171 : vector<16x32xf32>
      %179 = math.sqrt %176 : vector<16x1xf32>
      %cst_75 = arith.constant 9.99999997E-7 : f32
      %180 = vector.broadcast %cst_75 : f32 to vector<16x1xf32>
      %181 = arith.addf %179, %180 : vector<16x1xf32>
      %182 = vector.broadcast %181 : vector<16x1xf32> to vector<16x32xf32>
      %183 = arith.divf %178, %182 : vector<16x32xf32>
      %184 = vector.broadcast %165 : vector<1x32xf32> to vector<16x32xf32>
      %185 = arith.addf %183, %184 : vector<16x32xf32>
      %c0_76 = arith.constant 0 : index
      %c0_77 = arith.constant 0 : index
      %186 = vector.load %arg7[%c0_76, %c0_77] : memref<16x32xf32, #tpu.memory_space<vmem>>, vector<16x32xf32>
      tpu.vector_store %arg7[%c0_76, %c0_77], %185 {strides = array<i32>} : memref<16x32xf32, #tpu.memory_space<vmem>>, vector<16x32xf32>,
    } else {
    }
    return
  }
  func.func @transform_0(%arg0: i32) -> (i32, i32) {
    %c0_i32 = arith.constant 0 : i32
    %c0_i32_0 = arith.constant 0 : i32
    %c0_i32_1 = arith.constant 0 : i32
    return %c0_i32, %c0_i32_0 : i32, i32
  }
  func.func @transform_1(%arg0: i32) -> (i32, i32) {
    %c0_i32 = arith.constant 0 : i32
    %c0_i32_0 = arith.constant 0 : i32
    %c0_i32_1 = arith.constant 0 : i32
    return %c0_i32, %c0_i32_0 : i32, i32
  }
  func.func @transform_2(%arg0: i32) -> (i32, i32, i32) {
    %c0_i32 = arith.constant 0 : i32
    %c0_i32_0 = arith.constant 0 : i32
    %c0_i32_1 = arith.constant 0 : i32
    return %arg0, %c0_i32, %c0_i32_0 : i32, i32, i32
  }
  func.func @transform_3(%arg0: i32) -> (i32, i32, i32) {
    %c0_i32 = arith.constant 0 : i32
    %c0_i32_0 = arith.constant 0 : i32
    %c0_i32_1 = arith.constant 0 : i32
    return %arg0, %c0_i32, %c0_i32_0 : i32, i32, i32
  }
  func.func @transform_4(%arg0: i32) -> (i32, i32, i32) {
    %c0_i32 = arith.constant 0 : i32
    %c0_i32_0 = arith.constant 0 : i32
    %c0_i32_1 = arith.constant 0 : i32
    return %arg0, %c0_i32, %c0_i32_0 : i32, i32, i32
  }
  func.func @transform_5(%arg0: i32) -> (i32, i32, i32) {
    %c0_i32 = arith.constant 0 : i32
    %c0_i32_0 = arith.constant 0 : i32
    %c0_i32_1 = arith.constant 0 : i32
    return %arg0, %c0_i32, %c0_i32_0 : i32, i32, i32
  }
  func.func @transform_6(%arg0: i32) -> (i32, i32) {
    %c0_i32 = arith.constant 0 : i32
    %c0_i32_0 = arith.constant 0 : i32
    %c0_i32_1 = arith.constant 0 : i32
    return %c0_i32, %c0_i32_0 : i32, i32
  }
}

</mosaic_0001>

<bundles_post_ra>
// kernel: tpu_custom_call.1
= control target key start
LH: loop header
LB: loop body
LE: loop exit
PB: predicated region body
PF: predicated region fallthrough
CT: control target
= control target key end

     0   :  { %11 = vsyncpa [#allocation4], 0  ;;  %s4665_s21 = smov 0   ;;  %s5184_s0 = inlined_call_operand.vmem [shape: f32[16,16], index: 0, kind: input, shape index: {}]   ;;  %s5185_s1 = inlined_call_operand.vmem [shape: f32[64,32], index: 1, kind: input, shape index: {}]   ;;  %s5186_s2 = inlined_call_operand.vmem [shape: f32[2,80,128], index: 2, kind: input, shape index: {}]   ;;  %s5187_s3 = inlined_call_operand.vmem [shape: f32[2,1,2048], index: 3, kind: input, shape index: {}]   ;;  %s5188_s4 = inlined_call_operand.vmem [shape: bf16[2,32,2048], index: 4, kind: input, shape index: {}]   ;;  %s5189_s5 = inlined_call_operand.vmem [shape: bf16[2,2048,32], index: 5, kind: input, shape index: {}]   ;;  %s5190_s6 = inlined_call_operand.hbm [shape: f32[16,32], index: 6, kind: output, shape index: {}]  }
   0x1 LB: > { %s4671_s22 = sadd.s32 4294967295, %s4611_s21   ;;  %p3725_p0 = scmp.ge.s32.totalorder %s4611_s21, 1  ;;  %s4611_s21 = sphi %s4665_s21, %s17_s21  }
   0x2   : > { %p237_p1 = scmp.lt.s32.totalorder %s4611_s21, 3 }
   0x4   : > { %p238_p2 = pnand %p3725_p0, %p237_p1 }
   0x5   : > { %p276_p3 = scmp.lt.s32.totalorder (!%p238_p2), %s4671_s22, 1  ;;  %p3732_p4 = scmp.ne.s32.totalorder (!%p238_p2), %s4671_s22, 0 }
   0x6   : > { %241 = sbr.rel (%p238_p2) target bundleno = 4869 (0x1305), region = 44 }
   0xd   : > { %s277_s23 = scalar_select %p276_p3, %s4671_s22, 1 }
   0xe   : > { %299 = sbr.rel (%p3732_p4) target bundleno = 241 (0xf1), region = 48  ;;  %v300_v0 = vld [vmem:[%s5185_s1] sm:$0xff] (!%p3732_p4)  ;;  %v301_v1 = vld [vmem:[%s5185_s1 + $0x8] sm:$0xff] (!%p3732_p4)  ;;  %vm311_vm0 = vcmask (!%p3732_p4), 130048   ;;  %v3733_v5 = vld [vmem:[%s5185_s1 + $0x10] ss:$0 sm:$0xff] (!%p3732_p4) }
   0xf   : > { %s4317_s24 = smul.u32 80, %s277_s23  ;;  %s3727_s25 = sshll.u32 %s277_s23, 4  ;;  %v305_v2 = vld [vmem:[%s5184_s0] sm:$0xff] (!%p3732_p4)  ;;  %v4257_v3 = vpack.c.bf16 (!%p3732_p4), %v301_v1, %v300_v0  ;;  %v306_v4 = vld [vmem:[%s5184_s0 + $0x8] sm:$0xff] (!%p3732_p4)  ;;  %v303_v12 = vld [vmem:[%s5185_s1 + $0x18] sm:$0xff] (!%p3732_p4)  ;;  %vm397_vm1 = vcmask (!%p3732_p4), 261120  }
  0x10   : > { %s4680_s28 = scalar_lea.vmem %s5187_s3, %s3727_s25  ;;  %s3946_s29 = sshll.u32 %s277_s23, 8  ;;  %4176 = vmatprep.mubr.msk.f32.mxu0 (!%p3732_p4), %vm311_vm0, %v305_v2  ;;  %v304_v9 = vld [vmem:[%s5185_s1 + $0x20] sm:$0xff] (!%p3732_p4) }
  0x11   : > { %s4685_s8 = scalar_lea.vmem %s5186_s2, %s4317_s24  ;;  %s4690_s11 = scalar_lea.vmem %s5188_s4, %s3946_s29  ;;  %4258 = vmatprep.subr.bf16.mxu0 (!%p3732_p4), %v4257_v3 }
  0x12   : > { %s3947_s12 = sshll.u32 %s277_s23, 10  ;;  %4260 = vmatpush3.bf16.msra.mxu0 (!%p3732_p4), %v4257_v3 }
  0x13   : > { %s4695_s15 = scalar_lea.vmem %s5189_s5, %s3947_s12 }
  0x15   : > { %4177 = vmatmul.mubr.msk.f32.vlgmr.msra.gmra.mrb[0].mxu0 %vm311_vm0, %v306_v4 }
  0xe8   : > { %v4178_v6 = vpop.f32.mrb[0].mxu0 }
  0xe9   : > { %v390_v7 = vadd.f32 %v4178_v6, %v3733_v5  ;;  %v384_v8 = vpop.f32.mrb[1].mxu0 }
  0xea   : > { %v385_v10 = vadd.f32 %v3733_v5, %v384_v8 }
  0xeb   : > { %v394_v11 = vmul.f32 5.656854, %v390_v7 }
  0xec   : > { %v393_v13 = vmul.f32 5.656854, %v385_v10 }
  0xed   : > { %v396_v14 = vadd.f32 %v394_v11, %v304_v9 }
  0xee   : > { %v395_v15 = vadd.f32 %v393_v13, %v303_v12 }
  0xef   : > { %399 = vst.msk [vmem:[#allocation2 + $0x8] sm:$0xff] %vm397_vm1, %v396_v14 }
  0xf0   : > { %398 = vst.msk [vmem:[#allocation2] sm:$0xff] %vm397_vm1, %v395_v15 }
  0xf1 PF: > { %vm419_vm2 = vcmask 261120   ;;  %v402_v30 = vld [vmem:[%s4685_s8] sm:$0xff]  ;;  %v403_v31 = vld [vmem:[%s4685_s8 + $0x8] sm:$0xff]  ;;  %v404_v32 = vld [vmem:[%s4685_s8 + $0x10] sm:$0xff]  ;;  %vm564_vm7 = vcmask 64512   ;;  %s4613_s10 = smov 96  }
  0xf2   : > { %v4261_v33 = vpack.c.bf16 %v403_v31, %v402_v30  ;;  %v405_v34 = vld [vmem:[%s4685_s8 + $0x18] sm:$0xff]  ;;  %v3736_v52 = vld [vmem:[%s4685_s8 + $0x49] ss:$0 sm:$0xff]  ;;  %v3737_v55 = vld [vmem:[%s4685_s8 + $0x4a] ss:$0 sm:$0xff]  ;;  %s4614_s12 = smov 88  }
  0xf3   : > { %v4265_v35 = vpack.c.bf16 %v405_v34, %v404_v32  ;;  %v3738_v62 = vld [vmem:[%s4685_s8 + $0x20] ss:$0 sm:$0xff]  ;;  %s4615_s13 = smov 120   ;;  %vm4748_vm8 = vmpackc.low %vm564_vm7, %vm564_vm7  ;;  %v4761_v11 = vld [vmem:[%s5185_s1 + $0x28] sm:$0xff]  ;;  %vm652_vm9 = vcmask 130048   ;;  %s4616_s19 = smov 64  }
  0xf4   : > { %4262 = vmatprep.subr.bf16.mxu0 %v4261_v33  ;;  %v4766_v14 = vld [vmem:[%s5185_s1 + $0x30] sm:$0xff]  ;;  %s4617_s20 = smov 56   ;;  %s4618_s24 = smov 112   ;;  %vm1402_vm10 = vcmask 195584  }
  0xf5   : > { %4264 = vmatpush3.bf16.msra.mxu0 %v4261_v33  ;;  %s4619_s23 = smov 80   ;;  %s4620_s25 = smov 48  }
  0xf6   : > { %v418_v17 = vld [vmem:[#allocation2 + $0x8] sm:$0xff]  ;;  %4266 = vmatprep.subr.bf16.mxu0 %v4265_v35  ;;  %s4621_s26 = smov 104   ;;  %s4622_s27 = smov 72  }
  0xf7   : > { %v417_v16 = vld [vmem:[#allocation2] sm:$0xff]  ;;  %v423_v19 = vsel %vm419_vm2, %v418_v17, 0.0  ;;  %s4623_s29 = smov 40   ;;  %s4624_s30 = smov 8  }
  0xf8   : > { %v420_v18 = vsel %vm419_vm2, %v417_v16, 0.0  ;;  %s4625_s7 = smov 16   ;;  %s4626_s9 = smov 24  }
  0xf9   : > { %421 = vadd.xlane.f32.xlu0 %v420_v18  ;;  %4268 = vmatpush3.bf16.msra.mxu0 %v4265_v35  ;;  %p3939_p5 = scmp.ne.s32.totalorder %s4671_s22, 1 }
  0xfd   : > { %424 = vadd.xlane.f32.xlu0 %v423_v19 }
 0x186   : > { %v422_v20 = vpop.xlane.xlu0 %421 }
 0x187   : > { %v427_v21 = vmul.f32 0.03125, %v422_v20 }
 0x189   : > { %v429_v22 = vsub.f32 %v417_v16, %v427_v21 }
 0x18a   : > { %v425_v23 = vpop.xlane.xlu0 %424 }
 0x18b   : > { %v428_v24 = vmul.f32 0.03125, %v425_v23  ;;  %v431_v25 = vmul.f32 %v429_v22, %v429_v22  ;;  %v445_v53 = vmul.f32 %v3736_v52, %v429_v22 }
 0x18d   : > { %v430_v26 = vsub.f32 %v418_v17, %v428_v24  ;;  %v433_v27 = vsel %vm419_vm2, %v431_v25, 0.0 }
 0x18e   : > { %434 = vadd.xlane.f32.xlu1 %v433_v27 }
 0x18f   : > { %v432_v28 = vmul.f32 %v430_v26, %v430_v26  ;;  %v446_v57 = vmul.f32 %v3736_v52, %v430_v26 }
 0x191   : > { %v436_v29 = vsel %vm419_vm2, %v432_v28, 0.0 }
 0x192   : > { %437 = vadd.xlane.f32.xlu1 %v436_v29 }
 0x21b   : > { %v435_v36 = vpop.xlane.xlu1 %434 }
 0x21c   : > { %v439_v37 = vmul.f32 0.032258064, %v435_v36 }
 0x21e   : > { %4517 = vrsqrt.f32 %v439_v37  ;;  %vm449_vm3 = vcmp.eq.f32.partialorder %v439_v37, inf  ;;  %v452_v42 = vand.u32 2147483648, %v439_v37  ;;  %vm451_vm4 = vcmp.eq.f32.partialorder %v439_v37, 0.0 }
 0x21f   : > { %v438_v38 = vpop.xlane.xlu1 %437 }
 0x220   : > { %v440_v39 = vmul.f32 0.032258064, %v438_v38 }
 0x222   : > { %4519 = vrsqrt.f32 %v440_v39  ;;  %vm456_vm5 = vcmp.eq.f32.partialorder %v440_v39, inf  ;;  %v459_v48 = vand.u32 2147483648, %v440_v39  ;;  %vm458_vm6 = vcmp.eq.f32.partialorder %v440_v39, 0.0 }
 0x228   : > { %v4518_v40 = vpop.eup %4517 }
 0x229   : > { %v448_v41 = vmul.f32 %v4518_v40, %v439_v37 }
 0x22b   : > { %v450_v43 = vsel %vm449_vm3, %v439_v37, %v448_v41 }
 0x22c   : > { %v4520_v44 = vpop.eup %4519  ;;  %v453_v45 = vsel %vm451_vm4, %v452_v42, %v450_v43 }
 0x22d   : > { %v455_v46 = vmul.f32 %v4520_v44, %v440_v39  ;;  %v461_v47 = vadd.f32 1e-06, %v453_v45 }
 0x22f   : > { %v457_v49 = vsel %vm456_vm5, %v440_v39, %v455_v46  ;;  %4521 = vrcp.f32 %v461_v47 }
 0x230   : > { %v460_v50 = vsel %vm458_vm6, %v459_v48, %v457_v49 }
 0x231   : > { %v462_v51 = vadd.f32 1e-06, %v460_v50 }
 0x233   : > { %4523 = vrcp.f32 %v462_v51 }
 0x239   : > { %v4522_v54 = vpop.eup %4521 }
 0x23a   : > { %v464_v56 = vmul.f32 %v4522_v54, %v445_v53 }
 0x23c   : > { %v471_v58 = vadd.f32 %v3737_v55, %v464_v56 }
 0x23d   : > { %v4524_v59 = vpop.eup %4523 }
 0x23e   : > { %v466_v60 = vmul.f32 %v4524_v59, %v446_v57  ;;  %4187 = vmatprep.mubr.msk.f32.mxu0 %vm419_vm2, %v471_v58 }
 0x240   : > { %v472_v61 = vadd.f32 %v3737_v55, %v466_v60 }
 0x242   : > { %4188 = vmatmul.mubr.msk.f32.vlgmr.msra.gmra.mrb[0].mxu0 %vm419_vm2, %v472_v61 }
 0x315   : > { %v4189_v63 = vpop.f32.mrb[0].mxu0 }
 0x316   : > { %v4732_v0 = vadd.f32 %v4189_v63, %v3738_v62  ;;  %v549_v1 = vpop.f32.mrb[1].mxu0 }
 0x317   : > { %v4734_v2 = vadd.f32 %v3738_v62, %v549_v1 }
 0x319   : > { %4194 = vmatprep.mubr.msk.f32.mxu1 %vm564_vm7, %v4734_v2  ;;  %v4740_v3 = vpack.i.bf16 %v4732_v0, %v4734_v2 }
 0x31b   : > { %4350 = vrot.lane.b32.xlu0 %v4740_v3, %s4613_s10 }
 0x31f   : > { %4360 = vrot.lane.b32.xlu0 %v4740_v3, %s4614_s12 }
 0x323   : > { %762 = vrot.lane.b32.xlu0 %v4734_v2, %s4615_s13 }
 0x327   : > { %764 = vrot.lane.b32.xlu0 %v4732_v0, %s4615_s13 }
 0x38d   : > { %v4351_v4 = vpop.permute.xlu0 %4350 }
 0x38e   : > { %v4353_v5 = vunpack.i.h.bf16 %v4351_v4  ;;  %v4352_v6 = vunpack.i.l.bf16 %v4351_v4 }
 0x390   : > { %v4269_v8 = vpack.c.bf16 %v4353_v5, %v4352_v6 }
 0x391   : > { %v4361_v31 = vpop.permute.xlu0 %4360 }
 0x392   : > { %4271 = vmatprep.subr.msk.bf16.mxu1 %vm4748_vm8, %v4269_v8  ;;  %v4363_v33 = vunpack.i.h.bf16 %v4361_v31  ;;  %v4362_v34 = vunpack.i.l.bf16 %v4361_v31 }
 0x393   : > { %4274 = vmatpush3.bf16.xpose.msk.msra.mxu1 %vm4748_vm8, %v4269_v8 }
 0x394   : > { %v4279_v38 = vpack.c.bf16 %v4363_v33, %v4362_v34 }
 0x395   : > { %v763_v43 = vpop.permute.xlu0 %762 }
 0x399   : > { %v765_v44 = vpop.permute.xlu0 %764 }
 0x39a   : > { %4195 = vmatmul.mubr.msk.f32.vlgmr.msra.gmra.mrb[0].mxu1 %vm564_vm7, %v4732_v0 }
 0x46d   : > { %v4196_v9 = vpop.f32.mrb[0].mxu1 }
 0x46e   : > { %v639_v10 = vpop.f32.mrb[1].mxu1  ;;  %v649_v12 = vmul.f32 0.35355338, %v4196_v9 }
 0x46f   : > { %v648_v13 = vmul.f32 0.35355338, %v639_v10 }
 0x470   : > { %v651_v17 = vadd.f32 %v649_v12, %v4766_v14 }
 0x471   : > { %v650_v15 = vadd.f32 %v648_v13, %v4761_v11 }
 0x472   : > { %v656_v18 = vsel %vm652_vm9, %v651_v17, -inf }
 0x473   : > { %v653_v16 = vsel %vm652_vm9, %v650_v15, -inf }
 0x474   : > { %654 = vmax.xlane.f32.xlu1 %v653_v16 }
 0x478   : > { %657 = vmax.xlane.f32.xlu1 %v656_v18 }
 0x501   : > { %v655_v19 = vpop.xlane.xlu1 %654 }
 0x502   : > { %v659_v20 = vsub.f32 %v650_v15, %v655_v19 }
 0x504   : > { %v661_v23 = vmul.f32 1.442695, %v659_v20 }
 0x505   : > { %v658_v21 = vpop.xlane.xlu1 %657 }
 0x506   : > { %v660_v22 = vsub.f32 %v651_v17, %v658_v21 }
 0x508   : > { %v663_v24 = vmul.f32 1.442695, %v660_v22 }
 0x50a   : > { %4525 = vpow2.f32 %v663_v24 }
 0x50b   : > { %4527 = vpow2.f32 %v661_v23 }
 0x514   : > { %v4526_v25 = vpop.eup %4525 }
 0x515   : > { %v668_v26 = vsel %vm652_vm9, %v4526_v25, 0.0  ;;  %v4528_v27 = vpop.eup %4527 }
 0x516   : > { %669 = vadd.xlane.f32.xlu1 %v668_v26  ;;  %v665_v28 = vsel %vm652_vm9, %v4528_v27, 0.0 }
 0x51a   : > { %666 = vadd.xlane.f32.xlu1 %v665_v28 }
 0x52b   : > { %4355 = vrot.lane.b32.xlu1 %v4740_v3, %s4616_s19 }
 0x5a3   : > { %v670_v29 = vpop.xlane.xlu1 %669 }
 0x5a4   : > { %4529 = vrcp.f32 %v670_v29 }
 0x5a7   : > { %v667_v30 = vpop.xlane.xlu1 %666 }
 0x5a8   : > { %4531 = vrcp.f32 %v667_v30 }
 0x5ab   : > { %v4356_v32 = vpop.permute.xlu1 %4355 }
 0x5ac   : > { %v4358_v35 = vunpack.i.h.bf16 %v4356_v32  ;;  %v4357_v36 = vunpack.i.l.bf16 %v4356_v32 }
 0x5ae   : > { %v4275_v37 = vpack.c.bf16 %v4358_v35, %v4357_v36  ;;  %v4530_v39 = vpop.eup %4529 }
 0x5af   : > { %v674_v42 = vmul.f32 %v4530_v39, %v4526_v25 }
 0x5b0   : > { %4276 = vmatprep.subr.bf16.mxu1 %v4275_v37 }
 0x5b1   : > { %4278 = vmatpush3.bf16.msra.mxu1 %v4275_v37 }
 0x5b2   : > { %v4532_v40 = vpop.eup %4531  ;;  %4281 = vmatprep.subr.msk.bf16.mxu1 %vm4748_vm8, %v4279_v38 }
 0x5b3   : > { %v673_v41 = vmul.f32 %v4532_v40, %v4528_v27 }
 0x5b5   : > { %4201 = vmatprep.mubr.msk.f32.mxu1 %vm652_vm9, %v673_v41 }
 0x5b6   : > { %4202 = vmatmul.mubr.msk.f32.vlgmr.msra.gmra.mrb[2].mxu1 %vm652_vm9, %v674_v42 }
 0x5b7   : > { %4208 = vmatprep.mubr.msk.f32.mxu1 %vm564_vm7, %v763_v43 }
 0x5ba   : > { %4284 = vmatpush3.bf16.xpose.msk.msra.mxu1 %vm4748_vm8, %v4279_v38 }
 0x5c1   : > { %4209 = vmatmul.mubr.msk.f32.vlgmr.msra.gmra.mrb[4].mxu1 %vm564_vm7, %v765_v44 }
 0x689   : > { %v4783_v45 = vpop.f32.mrb[2].mxu1 }
 0x68a   : > { %v4785_v46 = vpop.f32.mrb[3].mxu1 }
 0x694   : > { %v4210_v47 = vpop.f32.mrb[4].mxu1 }
 0x695   : > { %v854_v48 = vmul.f32 0.35355338, %v4210_v47  ;;  %v844_v49 = vpop.f32.mrb[5].mxu1 }
 0x696   : > { %v853_v50 = vmul.f32 0.35355338, %v844_v49 }
 0x697   : > { %v856_v51 = vadd.f32 %v854_v48, %v4766_v14 }
 0x698   : > { %v855_v52 = vadd.f32 %v853_v50, %v4761_v11 }
 0x699   : > { %v860_v53 = vsel %vm652_vm9, %v856_v51, -inf }
 0x69a   : > { %861 = vmax.xlane.f32.xlu0 %v860_v53  ;;  %v857_v54 = vsel %vm652_vm9, %v855_v52, -inf }
 0x69b   : > { %858 = vmax.xlane.f32.xlu1 %v857_v54 }
 0x6ac   : > { %4365 = vrot.lane.b32.xlu1 %v4740_v3, %s4617_s20 }
 0x6b0   : > { %966 = vrot.lane.b32.xlu1 %v4734_v2, %s4618_s24 }
 0x6b4   : > { %968 = vrot.lane.b32.xlu1 %v4732_v0, %s4618_s24 }
 0x727   : > { %v862_v55 = vpop.xlane.xlu0 %861 }
 0x728   : > { %v864_v56 = vsub.f32 %v856_v51, %v862_v55  ;;  %v859_v57 = vpop.xlane.xlu1 %858 }
 0x729   : > { %v863_v58 = vsub.f32 %v855_v52, %v859_v57 }
 0x72a   : > { %v867_v59 = vmul.f32 1.442695, %v864_v56 }
 0x72b   : > { %v865_v60 = vmul.f32 1.442695, %v863_v58 }
 0x72c   : > { %4533 = vpow2.f32 %v867_v59  ;;  %v4366_v61 = vpop.permute.xlu1 %4365 }
 0x72d   : > { %v4368_v62 = vunpack.i.h.bf16 %v4366_v61  ;;  %v4367_v63 = vunpack.i.l.bf16 %v4366_v61  ;;  %4535 = vpow2.f32 %v865_v60 }
 0x72f   : > { %v4285_v1 = vpack.c.bf16 %v4368_v62, %v4367_v63 }
 0x730   : > { %v967_v21 = vpop.permute.xlu1 %966 }
 0x731   : > { %4286 = vmatprep.subr.bf16.mxu0 %v4285_v1 }
 0x732   : > { %4288 = vmatpush3.bf16.msra.mxu0 %v4285_v1 }
 0x734   : > { %v969_v22 = vpop.permute.xlu1 %968 }
 0x736   : > { %v4534_v4 = vpop.eup %4533 }
 0x737   : > { %v872_v5 = vsel %vm652_vm9, %v4534_v4, 0.0  ;;  %v4536_v6 = vpop.eup %4535 }
 0x738   : > { %873 = vadd.xlane.f32.xlu0 %v872_v5  ;;  %v869_v8 = vsel %vm652_vm9, %v4536_v6, 0.0 }
 0x73c   : > { %870 = vadd.xlane.f32.xlu0 %v869_v8 }
 0x752   : > { %4370 = vrot.lane.b32.xlu0 %v4740_v3, %s4619_s23 }
 0x7c5   : > { %v874_v9 = vpop.xlane.xlu0 %873 }
 0x7c6   : > { %4537 = vrcp.f32 %v874_v9 }
 0x7c9   : > { %v871_v10 = vpop.xlane.xlu0 %870 }
 0x7ca   : > { %4539 = vrcp.f32 %v871_v10 }
 0x7cd   : > { %v4371_v12 = vpop.permute.xlu0 %4370 }
 0x7ce   : > { %v4373_v13 = vunpack.i.h.bf16 %v4371_v12  ;;  %v4372_v15 = vunpack.i.l.bf16 %v4371_v12 }
 0x7d0   : > { %v4289_v16 = vpack.c.bf16 %v4373_v13, %v4372_v15  ;;  %v4538_v17 = vpop.eup %4537 }
 0x7d1   : > { %v878_v20 = vmul.f32 %v4538_v17, %v4534_v4 }
 0x7d2   : > { %4291 = vmatprep.subr.msk.bf16.mxu0 %vm4748_vm8, %v4289_v16 }
 0x7d4   : > { %v4540_v18 = vpop.eup %4539 }
 0x7d5   : > { %v877_v19 = vmul.f32 %v4540_v18, %v4536_v6 }
 0x7d7   : > { %4215 = vmatprep.mubr.msk.f32.mxu0 %vm652_vm9, %v877_v19 }
 0x7d8   : > { %4216 = vmatmul.mubr.msk.f32.vlgmr.msra.gmra.mrb[2].mxu0 %vm652_vm9, %v878_v20 }
 0x7d9   : > { %4294 = vmatpush3.bf16.xpose.msk.msra.mxu0 %vm4748_vm8, %v4289_v16  ;;  %4222 = vmatprep.mubr.msk.f32.mxu0 %vm564_vm7, %v967_v21 }
 0x7e0   : > { %4223 = vmatmul.mubr.msk.f32.vlgmr.msra.gmra.mrb[4].mxu0 %vm564_vm7, %v969_v22 }
 0x8ab   : > { %v4805_v23 = vpop.f32.mrb[2].mxu0 }
 0x8ac   : > { %v4807_v24 = vpop.f32.mrb[3].mxu0 }
 0x8b3   : > { %v4224_v25 = vpop.f32.mrb[4].mxu0 }
 0x8b4   : > { %v1058_v26 = vmul.f32 0.35355338, %v4224_v25  ;;  %v1048_v27 = vpop.f32.mrb[5].mxu0 }
 0x8b5   : > { %v1057_v28 = vmul.f32 0.35355338, %v1048_v27 }
 0x8b6   : > { %v1060_v29 = vadd.f32 %v1058_v26, %v4766_v14 }
 0x8b7   : > { %v1059_v30 = vadd.f32 %v1057_v28, %v4761_v11  ;;  %v407_v28 = vld [vmem:[%s4685_s8 + $0x28] sm:$0xff] }
 0x8b8   : > { %v1064_v31 = vsel %vm652_vm9, %v1060_v29, -inf }
 0x8b9   : > { %1065 = vmax.xlane.f32.xlu0 %v1064_v31  ;;  %v1061_v32 = vsel %vm652_vm9, %v1059_v30, -inf }
 0x8ba   : > { %1062 = vmax.xlane.f32.xlu1 %v1061_v32  ;;  %v410_v32 = vld [vmem:[%s4685_s8 + $0x40] sm:$0xff] }
 0x8cb   : > { %4375 = vrot.lane.b32.xlu1 %v4740_v3, %s4620_s25 }
 0x8cf   : > { %1170 = vrot.lane.b32.xlu1 %v4734_v2, %s4621_s26 }
 0x8d3   : > { %1172 = vrot.lane.b32.xlu1 %v4732_v0, %s4621_s26 }
 0x946   : > { %v1066_v33 = vpop.xlane.xlu0 %1065 }
 0x947   : > { %v1068_v34 = vsub.f32 %v1060_v29, %v1066_v33  ;;  %v1063_v35 = vpop.xlane.xlu1 %1062  ;;  %v408_v29 = vld [vmem:[%s4685_s8 + $0x30] sm:$0xff] }
 0x948   : > { %v1067_v36 = vsub.f32 %v1059_v30, %v1063_v35  ;;  %v409_v30 = vld [vmem:[%s4685_s8 + $0x38] sm:$0xff]  ;;  %v4309_v31 = vpack.c.bf16 %v408_v29, %v407_v28 }
 0x949   : > { %v1071_v37 = vmul.f32 1.442695, %v1068_v34  ;;  %v4313_v33 = vpack.c.bf16 %v410_v32, %v409_v30 }
 0x94a   : > { %v1069_v38 = vmul.f32 1.442695, %v1067_v36 }
 0x94b   : > { %4541 = vpow2.f32 %v1071_v37  ;;  %v4376_v39 = vpop.permute.xlu1 %4375 }
 0x94c   : > { %v4378_v40 = vunpack.i.h.bf16 %v4376_v39  ;;  %v4377_v41 = vunpack.i.l.bf16 %v4376_v39  ;;  %4543 = vpow2.f32 %v1069_v38 }
 0x94e   : > { %v4295_v42 = vpack.c.bf16 %v4378_v40, %v4377_v41 }
 0x94f   : > { %v1171_v57 = vpop.permute.xlu1 %1170 }
 0x950   : > { %4296 = vmatprep.subr.bf16.mxu1 %v4295_v42 }
 0x951   : > { %4298 = vmatpush3.bf16.msra.mxu1 %v4295_v42 }
 0x953   : > { %v1173_v58 = vpop.permute.xlu1 %1172 }
 0x955   : > { %v4542_v43 = vpop.eup %4541 }
 0x956   : > { %v1076_v44 = vsel %vm652_vm9, %v4542_v43, 0.0  ;;  %v4544_v2 = vpop.eup %4543 }
 0x957   : > { %1077 = vadd.xlane.f32.xlu0 %v1076_v44  ;;  %v1073_v0 = vsel %vm652_vm9, %v4544_v2, 0.0 }
 0x95b   : > { %1074 = vadd.xlane.f32.xlu0 %v1073_v0 }
 0x971   : > { %4380 = vrot.lane.b32.xlu0 %v4740_v3, %s4622_s27 }
 0x9e4   : > { %v1078_v47 = vpop.xlane.xlu0 %1077 }
 0x9e5   : > { %4545 = vrcp.f32 %v1078_v47  ;;  %v3767_v47 = vld [vmem:[%s4685_s8 + $0x48] ss:$0 sm:$0xff] }
 0x9e8   : > { %v1075_v48 = vpop.xlane.xlu0 %1074 }
 0x9e9   : > { %4547 = vrcp.f32 %v1075_v48 }
 0x9ec   : > { %v4381_v49 = vpop.permute.xlu0 %4380 }
 0x9ed   : > { %v4383_v50 = vunpack.i.h.bf16 %v4381_v49  ;;  %v4382_v51 = vunpack.i.l.bf16 %v4381_v49  ;;  %v4565_v49 = vld [vmem:[#allocation2 + $0x8] sm:$0xff] }
 0x9ef   : > { %v4299_v52 = vpack.c.bf16 %v4383_v50, %v4382_v51  ;;  %v4546_v53 = vpop.eup %4545  ;;  %v4566_v51 = vld [vmem:[#allocation2] sm:$0xff] }
 0x9f0   : > { %v1082_v56 = vmul.f32 %v4546_v53, %v4542_v43 }
 0x9f1   : > { %4301 = vmatprep.subr.msk.bf16.mxu1 %vm4748_vm8, %v4299_v52 }
 0x9f3   : > { %v4548_v54 = vpop.eup %4547 }
 0x9f4   : > { %v1081_v55 = vmul.f32 %v4548_v54, %v4544_v2 }
 0x9f6   : > { %4229 = vmatprep.mubr.msk.f32.mxu1 %vm652_vm9, %v1081_v55 }
 0x9f7   : > { %4230 = vmatmul.mubr.msk.f32.vlgmr.msra.gmra.mrb[6].mxu1 %vm652_vm9, %v1082_v56 }
 0x9f8   : > { %4304 = vmatpush3.bf16.xpose.msk.msra.mxu1 %vm4748_vm8, %v4299_v52  ;;  %4236 = vmatprep.mubr.msk.f32.mxu1 %vm564_vm7, %v1171_v57 }
 0x9ff   : > { %4237 = vmatmul.mubr.msk.f32.vlgmr.msra.gmra.mrb[8].mxu1 %vm564_vm7, %v1173_v58 }
 0xaca   : > { %v4231_v59 = vpop.f32.mrb[6].mxu1 }
 0xacb   : > { %v1161_v60 = vpop.f32.mrb[7].mxu1 }
 0xad2   : > { %v4238_v61 = vpop.f32.mrb[8].mxu1 }
 0xad3   : > { %v1262_v62 = vmul.f32 0.35355338, %v4238_v61  ;;  %v1252_v63 = vpop.f32.mrb[9].mxu1 }
 0xad4   : > { %v1261_v1 = vmul.f32 0.35355338, %v1252_v63 }
 0xad5   : > { %v1264_v4 = vadd.f32 %v1262_v62, %v4766_v14 }
 0xad6   : > { %v1263_v5 = vadd.f32 %v1261_v1, %v4761_v11 }
 0xad7   : > { %v1268_v6 = vsel %vm652_vm9, %v1264_v4, -inf }
 0xad8   : > { %1269 = vmax.xlane.f32.xlu0 %v1268_v6  ;;  %v1265_v7 = vsel %vm652_vm9, %v1263_v5, -inf  ;;  %v1555_v6 = vld [vmem:[%s4690_s11 + $0x40] sm:$0xff] }
 0xad9   : > { %1266 = vmax.xlane.f32.xlu1 %v1265_v7  ;;  %v1548_v7 = vld [vmem:[%s4690_s11 + $0x8] sm:$0xff] }
 0xaea   : > { %4385 = vrot.lane.b32.xlu1 %v4740_v3, %s4623_s29 }
 0xaee   : > { %1378 = vrot.lane.b32.xlu1 %v4805_v23, %s4624_s30 }
 0xaf2   : > { %1384 = vrot.lane.b32.xlu1 %v1161_v60, %s4625_s7 }
 0xaf6   : > { %1386 = vrot.lane.b32.xlu1 %v4231_v59, %s4625_s7 }
 0xb65   : > { %v1270_v8 = vpop.xlane.xlu0 %1269 }
 0xb66   : > { %v1272_v14 = vsub.f32 %v1264_v4, %v1270_v8  ;;  %v1267_v9 = vpop.xlane.xlu1 %1266 }
 0xb67   : > { %v1271_v11 = vsub.f32 %v1263_v5, %v1267_v9  ;;  %v1547_v5 = vld [vmem:[%s4690_s11] sm:$0xff] }
 0xb68   : > { %v1275_v10 = vmul.f32 1.442695, %v1272_v14  ;;  %v3771_v8 = vcombine.high %v1547_v5, %v1555_v6  ;;  %v1556_v14 = vld [vmem:[%s4690_s11 + $0x48] sm:$0xff]  ;;  %v3770_v9 = vcombine.low %v1547_v5, %v1555_v6 }
 0xb69   : > { %v1273_v12 = vmul.f32 1.442695, %v1271_v11  ;;  %v3772_v11 = vcombine.low %v1548_v7, %v1556_v14 }
 0xb6a   : > { %v4386_v13 = vpop.permute.xlu1 %4385  ;;  %1826 = vmatprep.subr.bf16.mxu1 %v3771_v8 }
 0xb6b   : > { %4549 = vpow2.f32 %v1273_v12  ;;  %v4388_v15 = vunpack.i.h.bf16 %v4386_v13  ;;  %v4387_v16 = vunpack.i.l.bf16 %v4386_v13  ;;  %1827 = vmatpush1.bf16.msra.mxu1 %v3770_v9  ;;  %v1563_v12 = vld [vmem:[%s4690_s11 + $0x80] sm:$0xff] }
 0xb6c   : > { %4551 = vpow2.f32 %v1275_v10  ;;  %v3773_v10 = vcombine.high %v1548_v7, %v1556_v14  ;;  %v1571_v13 = vld [vmem:[%s4690_s11 + $0xc0] sm:$0xff] }
 0xb6d   : > { %v4305_v17 = vpack.c.bf16 %v4388_v15, %v4387_v16  ;;  %v1564_v15 = vld [vmem:[%s4690_s11 + $0x88] sm:$0xff]  ;;  %v3786_v16 = vcombine.low %v1563_v12, %v1571_v13  ;;  %v1567_v14 = vld [vmem:[%s4690_s11 + $0xa0] sm:$0xff] }
 0xb6e   : > { %v1379_v35 = vpop.permute.xlu1 %1378  ;;  %v1575_v9 = vld [vmem:[%s4690_s11 + $0xe0] sm:$0xff] }
 0xb6f   : > { %4306 = vmatprep.subr.bf16.mxu0 %v4305_v17  ;;  %v1399_v41 = vsel %vm564_vm7, %v4783_v45, %v1379_v35 }
 0xb70   : > { %4308 = vmatpush3.bf16.msra.mxu0 %v4305_v17  ;;  %v3787_v17 = vcombine.high %v1563_v12, %v1571_v13 }
 0xb71   : > { %4310 = vmatprep.subr.bf16.mxu0 %v4309_v31 }
 0xb72   : > { %v1385_v36 = vpop.permute.xlu1 %1384  ;;  %1828 = vmatprep.subr.bf16.mxu1 %v3787_v17  ;;  %v1553_v17 = vld [vmem:[%s4690_s11 + $0x30] sm:$0xff] }
 0xb73   : > { %1829 = vmatpush1.bf16.msra.mxu1 %v3786_v16 }
 0xb75   : > { %v4550_v3 = vpop.eup %4549 }
 0xb76   : > { %v1277_v18 = vsel %vm652_vm9, %v4550_v3, 0.0  ;;  %v4552_v19 = vpop.eup %4551  ;;  %v1387_v38 = vpop.permute.xlu1 %1386 }
 0xb77   : > { %1278 = vadd.xlane.f32.xlu0 %v1277_v18  ;;  %v1280_v20 = vsel %vm652_vm9, %v4552_v19, 0.0  ;;  %v1401_v44 = vsel %vm652_vm9, %v1399_v41, %v1387_v38 }
 0xb7b   : > { %1281 = vadd.xlane.f32.xlu0 %v1280_v20  ;;  %v4627_v20 = vmov 0  }
 0xb7c   : > { %1858 = vmatprep.mubr.bf16.mxu1 %v4627_v20 }
 0xb91   : > { %1376 = vrot.lane.b32.xlu0 %v4807_v24, %s4624_s30 }
 0xc04   : > { %v1279_v21 = vpop.xlane.xlu0 %1278 }
 0xc05   : > { %4553 = vrcp.f32 %v1279_v21  ;;  %v1549_v21 = vld [vmem:[%s4690_s11 + $0x10] sm:$0xff] }
 0xc08   : > { %v1282_v22 = vpop.xlane.xlu0 %1281 }
 0xc09   : > { %4555 = vrcp.f32 %v1282_v22  ;;  %v1557_v22 = vld [vmem:[%s4690_s11 + $0x50] sm:$0xff] }
 0xc0c   : > { %v1377_v37 = vpop.permute.xlu0 %1376 }
 0xc0d   : > { %v1398_v39 = vsel %vm564_vm7, %v4785_v46, %v1377_v37 }
 0xc0e   : > { %v1400_v42 = vsel %vm652_vm9, %v1398_v39, %v1385_v36 }
 0xc0f   : > { %v4554_v23 = vpop.eup %4553 }
 0xc10   : > { %v1285_v25 = vmul.f32 %v4554_v23, %v4550_v3  ;;  %v1572_v3 = vld [vmem:[%s4690_s11 + $0xc8] sm:$0xff]  ;;  %v1550_v23 = vld [vmem:[%s4690_s11 + $0x18] sm:$0xff] }
 0xc11   : > { %v3788_v18 = vcombine.low %v1564_v15, %v1572_v3 }
 0xc12   : > { %4243 = vmatprep.mubr.msk.f32.mxu0 %vm652_vm9, %v1285_v25  ;;  %v3775_v25 = vcombine.high %v1549_v21, %v1557_v22 }
 0xc13   : > { %v4556_v26 = vpop.eup %4555 }
 0xc14   : > { %v1286_v27 = vmul.f32 %v4556_v26, %v4552_v19  ;;  %v3789_v19 = vcombine.high %v1564_v15, %v1572_v3  ;;  %v1558_v26 = vld [vmem:[%s4690_s11 + $0x58] sm:$0xff]  ;;  %1912 = vmatprep.subr.bf16.mxu1 %v3775_v25  ;;  %v3795_v15 = vcombine.high %v1567_v14, %v1575_v9  ;;  %v1561_v3 = vld [vmem:[%s4690_s11 + $0x70] sm:$0xff] }
 0xc15   : > { %v3776_v28 = vcombine.low %v1550_v23, %v1558_v26  ;;  %v3777_v29 = vcombine.high %v1550_v23, %v1558_v26  ;;  %v3783_v23 = vcombine.high %v1553_v17, %v1561_v3  ;;  %v1569_v26 = vld [vmem:[%s4690_s11 + $0xb0] sm:$0xff] }
 0xc16   : > { %4244 = vmatmul.mubr.msk.f32.vlgmr.msra.gmra.mrb[6].mxu0 %vm652_vm9, %v1286_v27  ;;  %v3774_v27 = vcombine.low %v1549_v21, %v1557_v22  ;;  %v3794_v21 = vcombine.low %v1567_v14, %v1575_v9  ;;  %v4973_v9 = vld [vmem:[%s4680_s28 + $0x8] sm:$0xff] }
 0xc17   : > { %4312 = vmatpush3.bf16.msra.mxu0 %v4309_v31 }
 0xc18   : > { %4314 = vmatprep.subr.bf16.mxu0 %v4313_v33 }
 0xc1b   : > { %4316 = vmatpush3.bf16.msra.mxu0 %v4313_v33 }
 0xc1c   : > { %1869 = vmatprep.subr.bf16.mxu0 %v3773_v10  ;;  %v1576_v10 = vld [vmem:[%s4690_s11 + $0xe8] sm:$0xff] }
 0xce9   : > { %v4245_v24 = vpop.f32.mrb[6].mxu0 }
 0xcea   : > { %1394 = vrot.lane.b32.xlu1 %v4245_v24, %s4626_s9  ;;  %v1365_v34 = vpop.f32.mrb[7].mxu0 }
 0xceb   : > { %1392 = vrot.lane.b32.xlu0 %v1365_v34, %s4626_s9 }
 0xd5c   : > { %v1395_v40 = vpop.permute.xlu1 %1394 }
 0xd5d   : > { %v1393_v43 = vpop.permute.xlu0 %1392  ;;  %v1404_v0 = vsel %vm1402_vm10, %v1401_v44, %v1395_v40 }
 0xd5e   : > { %v1403_v2 = vsel %vm1402_vm10, %v1400_v42, %v1393_v43 }
 0xd5f   : > { %4254 = vmatprep.mubr.msk.f32.mxu0 %vm419_vm2, %v1403_v2  ;;  %v3768_v2 = vld [vmem:[%s4685_s8 + $0x4b] ss:$0 sm:$0xff] }
 0xd60   : > { %4255 = vmatmul.mubr.msk.f32.vlgmr.msra.gmra.mrb[8].mxu0 %vm419_vm2, %v1404_v0 }
 0xd61   : > { %1870 = vmatpush1.bf16.msra.mxu0 %v3772_v11  ;;  %1901 = vmatprep.mubr.bf16.mxu0 %v4627_v20  ;;  %v1568_v11 = vld [vmem:[%s4690_s11 + $0xa8] sm:$0xff] }
 0xd62   : > { %1871 = vmatprep.subr.bf16.mxu0 %v3789_v19  ;;  %v3797_v16 = vcombine.high %v1568_v11, %v1576_v10  ;;  %v1562_v19 = vld [vmem:[%s4690_s11 + $0x78] sm:$0xff]  ;;  %v3796_v22 = vcombine.low %v1568_v11, %v1576_v10 }
 0xd65   : > { %1872 = vmatpush1.bf16.msra.mxu0 %v3788_v18  ;;  %v1554_v18 = vld [vmem:[%s4690_s11 + $0x38] sm:$0xff] }
 0xd66   : > { %1955 = vmatprep.subr.bf16.mxu0 %v3777_v29  ;;  %v3785_v25 = vcombine.high %v1554_v18, %v1562_v19  ;;  %v1578_v29 = vld [vmem:[%s4690_s11 + $0xf8] sm:$0xff] }
 0xe33   : > { %v4256_v48 = vpop.f32.mrb[8].mxu0 }
 0xe34   : > { %v1487_v46 = vadd.f32 %v4565_v49, %v4256_v48  ;;  %v1477_v50 = vpop.f32.mrb[9].mxu0 }
 0xe35   : > { %v1486_v52 = vadd.f32 %v4566_v51, %v1477_v50  ;;  %v3769_v50 = vld [vmem:[%s4685_s8 + $0x4c] ss:$0 sm:$0xff] }
 0xe36   : > { %v4853_v53 = vadd.f32 %v3767_v47, %v1487_v46 }
 0xe37   : > { %v4855_v45 = vadd.f32 %v3767_v47, %v1486_v52  ;;  %v1565_v52 = vld [vmem:[%s4690_s11 + $0x90] sm:$0xff] }
 0xe38   : > { %v1497_v54 = vsel %vm419_vm2, %v4853_v53, 0.0 }
 0xe39   : > { %1498 = vadd.xlane.f32.xlu1 %v1497_v54  ;;  %v1494_v55 = vsel %vm419_vm2, %v4855_v45, 0.0  ;;  %v1573_v54 = vld [vmem:[%s4690_s11 + $0xd0] sm:$0xff] }
 0xe3a   : > { %1495 = vadd.xlane.f32.xlu0 %v1494_v55  ;;  %v1566_v55 = vld [vmem:[%s4690_s11 + $0x98] sm:$0xff]  ;;  %v3790_v5 = vcombine.low %v1565_v52, %v1573_v54 }
 0xec6   : > { %v1499_v56 = vpop.xlane.xlu1 %1498 }
 0xec7   : > { %v1501_v57 = vmul.f32 0.03125, %v1499_v56  ;;  %v1496_v58 = vpop.xlane.xlu0 %1495  ;;  %v1574_v56 = vld [vmem:[%s4690_s11 + $0xd8] sm:$0xff] }
 0xec8   : > { %v1500_v59 = vmul.f32 0.03125, %v1496_v58  ;;  %v3792_v6 = vcombine.low %v1566_v55, %v1574_v56 }
 0xec9   : > { %v4862_v60 = vsub.f32 %v4853_v53, %v1501_v57 }
 0xeca   : > { %v4865_v61 = vsub.f32 %v4855_v45, %v1500_v59 }
 0xecb   : > { %v1505_v1 = vmul.f32 %v4862_v60, %v4862_v60  ;;  %v1519_v48 = vmul.f32 %v3768_v2, %v4862_v60  ;;  %v1552_v60 = vld [vmem:[%s4690_s11 + $0x28] sm:$0xff] }
 0xecc   : > { %v1504_v62 = vmul.f32 %v4865_v61, %v4865_v61  ;;  %v1518_v47 = vmul.f32 %v3768_v2, %v4865_v61  ;;  %v3793_v61 = vcombine.high %v1566_v55, %v1574_v56  ;;  %v4400_v2 = vld [vmem:[%s4695_s15 + $0x90] sm:$0xff]   ;;  %v4410_v55 = vld [vmem:[%s4695_s15 + $0xe8] sm:$0xff]  }
 0xecd   : > { %v1509_v4 = vsel %vm419_vm2, %v1505_v1, 0.0  ;;  %v1559_v1 = vld [vmem:[%s4690_s11 + $0x60] sm:$0xff]  ;;  %v4411_v56 = vld [vmem:[%s4695_s15 + $0x28] sm:$0xff]  }
 0xece   : > { %v1506_v63 = vsel %vm419_vm2, %v1504_v62, 0.0  ;;  %v3791_v62 = vcombine.high %v1565_v52, %v1573_v54  ;;  %v4408_v52 = vld [vmem:[%s4695_s15 + $0xa0] sm:$0xff]   ;;  %v4409_v54 = vld [vmem:[%s4695_s15 + $0x68] sm:$0xff]  }
 0xecf   : > { %1507 = vadd.xlane.f32.xlu0 %v1506_v63  ;;  %v1551_v63 = vld [vmem:[%s4690_s11 + $0x20] sm:$0xff] }
 0xed0   : > { %v3779_v7 = vcombine.high %v1551_v63, %v1559_v1  ;;  %v3778_v12 = vcombine.low %v1551_v63, %v1559_v1  ;;  %v4417_v63 = vld [vmem:[%s4695_s15 + $0x78] sm:$0xff]  }
 0xed1   : > { %v4418_v1 = vld [vmem:[%s4695_s15 + $0xf8] sm:$0xff]  }
 0xed3   : > { %1510 = vadd.xlane.f32.xlu0 %v1509_v4  ;;  %v1560_v4 = vld [vmem:[%s4690_s11 + $0x68] sm:$0xff] }
 0xed4   : > { %v3781_v8 = vcombine.high %v1552_v60, %v1560_v4  ;;  %v3780_v13 = vcombine.low %v1552_v60, %v1560_v4  ;;  %v4419_v60 = vld [vmem:[%s4695_s15 + $0x38] sm:$0xff]  }
 0xed5   : > { %v4420_v4 = vld [vmem:[%s4695_s15 + $0xb8] sm:$0xff]  }
 0xf5c   : > { %v1508_v30 = vpop.xlane.xlu0 %1507 }
 0xf5d   : > { %v1512_v31 = vmul.f32 0.032258064, %v1508_v30  ;;  %v3782_v30 = vcombine.low %v1553_v17, %v1561_v3 }
 0xf5f   : > { %4557 = vrsqrt.f32 %v1512_v31  ;;  %vm1522_vm11 = vcmp.eq.f32.partialorder %v1512_v31, inf  ;;  %v1525_v35 = vand.u32 2147483648, %v1512_v31  ;;  %vm1524_vm12 = vcmp.eq.f32.partialorder %v1512_v31, 0.0 }
 0xf60   : > { %v1511_v32 = vpop.xlane.xlu0 %1510 }
 0xf61   : > { %v1513_v33 = vmul.f32 0.032258064, %v1511_v32 }
 0xf63   : > { %4559 = vrsqrt.f32 %v1513_v33  ;;  %vm1529_vm13 = vcmp.eq.f32.partialorder %v1513_v33, inf  ;;  %v1532_v41 = vand.u32 2147483648, %v1513_v33  ;;  %vm1531_vm14 = vcmp.eq.f32.partialorder %v1513_v33, 0.0 }
 0xf69   : > { %v4558_v24 = vpop.eup %4557 }
 0xf6a   : > { %v1521_v34 = vmul.f32 %v4558_v24, %v1512_v31 }
 0xf6c   : > { %v1523_v36 = vsel %vm1522_vm11, %v1512_v31, %v1521_v34  ;;  %v3784_v31 = vcombine.low %v1554_v18, %v1562_v19 }
 0xf6d   : > { %v4560_v37 = vpop.eup %4559  ;;  %v1526_v38 = vsel %vm1524_vm12, %v1525_v35, %v1523_v36  ;;  %v4389_v35 = vld [vmem:[%s4695_s15 + $0x40] sm:$0xff]  }
 0xf6e   : > { %v1534_v39 = vadd.f32 1e-06, %v1526_v38  ;;  %v1528_v40 = vmul.f32 %v4560_v37, %v1513_v33  ;;  %v4390_v36 = vld [vmem:[%s4695_s15 + $0xc0] sm:$0xff]  }
 0xf6f   : > { %v4391_v37 = vld [vmem:[%s4695_s15] sm:$0xff]  }
 0xf70   : > { %4561 = vrcp.f32 %v1534_v39  ;;  %v1530_v42 = vsel %vm1529_vm13, %v1513_v33, %v1528_v40  ;;  %v4392_v38 = vld [vmem:[%s4695_s15 + $0x80] sm:$0xff]   ;;  %v4393_v39 = vld [vmem:[%s4695_s15 + $0x48] sm:$0xff]  }
 0xf71   : > { %v1533_v43 = vsel %vm1531_vm14, %v1532_v41, %v1530_v42  ;;  %v4394_v40 = vld [vmem:[%s4695_s15 + $0xc8] sm:$0xff]   ;;  %v4397_v42 = vld [vmem:[%s4695_s15 + $0x50] sm:$0xff]  }
 0xf72   : > { %v1535_v44 = vadd.f32 1e-06, %v1533_v43  ;;  %v4396_v41 = vld [vmem:[%s4695_s15 + $0x88] sm:$0xff]   ;;  %v4398_v43 = vld [vmem:[%s4695_s15 + $0xd0] sm:$0xff]  }
 0xf74   : > { %4563 = vrcp.f32 %v1535_v44  ;;  %v4399_v44 = vld [vmem:[%s4695_s15 + $0x10] sm:$0xff]  }
 0xf7a   : > { %v4562_v0 = vpop.eup %4561 }
 0xf7b   : > { %v1537_v49 = vmul.f32 %v4562_v0, %v1518_v47  ;;  %v4401_v0 = vld [vmem:[%s4695_s15 + $0x58] sm:$0xff]  }
 0xf7c   : > { %v4402_v47 = vld [vmem:[%s4695_s15 + $0xd8] sm:$0xff]  }
 0xf7d   : > { %v1544_v57 = vadd.f32 %v3769_v50, %v1537_v49  ;;  %v4404_v49 = vld [vmem:[%s4695_s15 + $0x98] sm:$0xff]  }
 0xf7e   : > { %v4564_v46 = vpop.eup %4563 }
 0xf7f   : > { %v1539_v51 = vmul.f32 %v4564_v46, %v1519_v48  ;;  %v4403_v48 = vld [vmem:[%s4695_s15 + $0x18] sm:$0xff]   ;;  %v4405_v46 = vld [vmem:[%s4695_s15 + $0x60] sm:$0xff]  }
 0xf81   : > { %v1545_v58 = vadd.f32 %v3769_v50, %v1539_v51  ;;  %v4406_v50 = vld [vmem:[%s4695_s15 + $0xe0] sm:$0xff]  }
 0xf82   : > { %v4407_v51 = vld [vmem:[%s4695_s15 + $0x20] sm:$0xff]  }
 0xf83   : > { %v4895_v59 = vpack.c.bf16 %v1545_v58, %v1544_v57  ;;  %v4412_v57 = vld [vmem:[%s4695_s15 + $0xa8] sm:$0xff]   ;;  %v4413_v58 = vld [vmem:[%s4695_s15 + $0x70] sm:$0xff]  }
 0xf85   : > { %3802 = vmatmul.mubr.msk.bf16.vlgmr.msra.gmra.mrb[12].mxu1 %vm419_vm2, %v4895_v59  ;;  %3803 = vmatmul.mubr.msk.bf16.vlgmr.msra.gmra.mrb[12].mxu0 %vm419_vm2, %v4895_v59 }
 0xf86   : > { %1913 = vmatpush1.bf16.msra.mxu1 %v3774_v27  ;;  %1956 = vmatpush1.bf16.msra.mxu0 %v3776_v28  ;;  %v1577_v27 = vld [vmem:[%s4690_s11 + $0xf0] sm:$0xff]  ;;  %v1570_v28 = vld [vmem:[%s4690_s11 + $0xb8] sm:$0xff] }
 0xf87   : > { %1914 = vmatprep.subr.bf16.mxu1 %v3791_v62  ;;  %1957 = vmatprep.subr.bf16.mxu0 %v3793_v61  ;;  %v3799_v32 = vcombine.high %v1569_v26, %v1577_v27  ;;  %v3801_v33 = vcombine.high %v1570_v28, %v1578_v29  ;;  %v3798_v24 = vcombine.low %v1569_v26, %v1577_v27  ;;  %v4415_v62 = vld [vmem:[%s4695_s15 + $0x30] sm:$0xff]  }
 0xf88   : > { %1944 = vmatprep.mubr.bf16.mxu1 %v4627_v20  ;;  %1987 = vmatprep.mubr.bf16.mxu0 %v4627_v20  ;;  %v3800_v34 = vcombine.low %v1570_v28, %v1578_v29  ;;  %v4416_v61 = vld [vmem:[%s4695_s15 + $0xb0] sm:$0xff]  }
 0xf8a   : > { %1915 = vmatpush1.bf16.msra.mxu1 %v3790_v5  ;;  %1958 = vmatpush1.bf16.msra.mxu0 %v3792_v6  ;;  %v4421_v5 = vld [vmem:[%s4695_s15 + $0x140] sm:$0xff]  }
 0xf8b   : > { %1998 = vmatprep.subr.bf16.mxu1 %v3779_v7  ;;  %2041 = vmatprep.subr.bf16.mxu0 %v3781_v8  ;;  %v4422_v6 = vld [vmem:[%s4695_s15 + $0x1c0] sm:$0xff]   ;;  %v1583_v7 = vlaneseq }
 0xf8d   : > { %3804 = vmatmul.mubr.msk.bf16.vlgmr.msra.gmra.mrb[16].mxu1 %vm419_vm2, %v4895_v59  ;;  %3805 = vmatmul.mubr.msk.bf16.vlgmr.msra.gmra.mrb[16].mxu0 %vm419_vm2, %v4895_v59  ;;  %v4969_v8 = vshrl.u32 %v1583_v7, 7 }
 0xf8e   : > { %1999 = vmatpush1.bf16.msra.mxu1 %v3778_v12  ;;  %2042 = vmatpush1.bf16.msra.mxu0 %v3780_v13  ;;  %v1579_v13 = vld [vmem:[%s4680_s28] sm:$0xff] }
 0xf8f   : > { %2000 = vmatprep.subr.bf16.mxu1 %v3795_v15  ;;  %2043 = vmatprep.subr.bf16.mxu0 %v3797_v16  ;;  %v1609_v14 = vsub.s32 6, %v4969_v8  ;;  %v1585_v10 = vsub.s32 0, %v4969_v8  ;;  %v1593_v12 = vsub.s32 2, %v4969_v8  ;;  %v1589_v15 = vsub.s32 1, %v4969_v8 }
 0xf90   : > { %2030 = vmatprep.mubr.bf16.mxu1 %v4627_v20  ;;  %2073 = vmatprep.mubr.bf16.mxu0 %v4627_v20  ;;  %v1597_v16 = vsub.s32 3, %v4969_v8  ;;  %v1613_v26 = vsub.s32 7, %v4969_v8 }
 0xf91   : > { %v4976_v11 = vrot.slane %v4973_v9, %v1609_v14  ;;  %v1586_v17 = vrot.slane %v1579_v13, %v1585_v10  ;;  %v1594_v3 = vrot.slane %v1579_v13, %v1593_v12  ;;  %v1590_v18 = vrot.slane %v1579_v13, %v1589_v15 }
 0xf92   : > { %2001 = vmatpush1.bf16.msra.mxu1 %v3794_v21  ;;  %2044 = vmatpush1.bf16.msra.mxu0 %v3796_v22  ;;  %v1598_v19 = vrot.slane %v1579_v13, %v1597_v16  ;;  %v1601_v21 = vsub.s32 4, %v4969_v8 }
 0xf93   : > { %2084 = vmatprep.subr.bf16.mxu1 %v3783_v23  ;;  %2127 = vmatprep.subr.bf16.mxu0 %v3785_v25  ;;  %v1605_v25 = vsub.s32 5, %v4969_v8 }
 0xf95   : > { %3806 = vmatmul.mubr.msk.bf16.vlgmr.msra.gmra.mrb[20].mxu1 %vm419_vm2, %v4895_v59  ;;  %3807 = vmatmul.mubr.msk.bf16.vlgmr.msra.gmra.mrb[20].mxu0 %vm419_vm2, %v4895_v59 }
 0xf96   : > { %2085 = vmatpush1.bf16.msra.mxu1 %v3782_v30  ;;  %2128 = vmatpush1.bf16.msra.mxu0 %v3784_v31 }
 0xf97   : > { %2086 = vmatprep.subr.bf16.mxu1 %v3799_v32  ;;  %2129 = vmatprep.subr.bf16.mxu0 %v3801_v33 }
 0xf98   : > { %2116 = vmatprep.mubr.bf16.mxu1 %v4627_v20  ;;  %2159 = vmatprep.mubr.bf16.mxu0 %v4627_v20  ;;  %v4395_v20 = vld [vmem:[%s4695_s15 + $0x8] sm:$0xff]  }
 0xf9a   : > { %2087 = vmatpush1.bf16.msra.mxu1 %v3798_v24  ;;  %2130 = vmatpush1.bf16.msra.mxu0 %v3800_v34 }
 0xf9b   : > { %3996 = vmatprep.subr.bf16.mxu1 %v4389_v35  ;;  %4018 = vmatprep.subr.bf16.mxu0 %v4390_v36 }
 0xf9d   : > { %3808 = vmatmul.mubr.msk.bf16.vlgmr.msra.gmra.mrb[24].mxu1 %vm419_vm2, %v4895_v59  ;;  %3809 = vmatmul.mubr.msk.bf16.vlgmr.msra.gmra.mrb[24].mxu0 %vm419_vm2, %v4895_v59  ;;  %v4414_v59 = vld [vmem:[%s4695_s15 + $0xf0] sm:$0xff]  }
 0xf9e   : > { %3997 = vmatpush3.bf16.msra.mxu1 %v4391_v37  ;;  %4019 = vmatpush3.bf16.msra.mxu0 %v4392_v38  ;;  %v1602_v38 = vrot.slane %v1579_v13, %v1601_v21 }
 0xf9f   : > { %3998 = vmatprep.subr.bf16.mxu1 %v4393_v39  ;;  %4020 = vmatprep.subr.bf16.mxu0 %v4394_v40  ;;  %v1610_v39 = vrot.slane %v1579_v13, %v1609_v14 }
 0xfa2   : > { %3999 = vmatpush3.bf16.msra.mxu1 %v4395_v20  ;;  %4021 = vmatpush3.bf16.msra.mxu0 %v4396_v41  ;;  %v1606_v41 = vrot.slane %v1579_v13, %v1605_v25 }
 0xfa3   : > { %4000 = vmatprep.subr.bf16.mxu1 %v4397_v42  ;;  %4022 = vmatprep.subr.bf16.mxu0 %v4398_v43  ;;  %v1614_v42 = vrot.slane %v1579_v13, %v1613_v26  ;;  %v1626_v13 = vrot.slane %v4973_v9, %v1593_v12  ;;  %v1630_v12 = vrot.slane %v4973_v9, %v1597_v16 }
 0xfa6   : > { %4001 = vmatpush3.bf16.msra.mxu1 %v4399_v44  ;;  %4023 = vmatpush3.bf16.msra.mxu0 %v4400_v2 }
 0xfa7   : > { %4002 = vmatprep.subr.bf16.mxu1 %v4401_v0  ;;  %4024 = vmatprep.subr.bf16.mxu0 %v4402_v47 }
 0xfaa   : > { %4003 = vmatpush3.bf16.msra.mxu1 %v4403_v48  ;;  %4025 = vmatpush3.bf16.msra.mxu0 %v4404_v49 }
 0xfab   : > { %4004 = vmatprep.subr.bf16.mxu1 %v4405_v46  ;;  %4026 = vmatprep.subr.bf16.mxu0 %v4406_v50 }
 0xfae   : > { %4005 = vmatpush3.bf16.msra.mxu1 %v4407_v51  ;;  %4027 = vmatpush3.bf16.msra.mxu0 %v4408_v52 }
 0xfaf   : > { %4006 = vmatprep.subr.bf16.mxu1 %v4409_v54  ;;  %4028 = vmatprep.subr.bf16.mxu0 %v4410_v55 }
 0xfb2   : > { %4007 = vmatpush3.bf16.msra.mxu1 %v4411_v56  ;;  %4029 = vmatpush3.bf16.msra.mxu0 %v4412_v57  ;;  %v4423_v57 = vld [vmem:[%s4695_s15 + $0x100] sm:$0xff]  }
 0xfb3   : > { %4008 = vmatprep.subr.bf16.mxu1 %v4413_v58  ;;  %4030 = vmatprep.subr.bf16.mxu0 %v4414_v59  ;;  %v4424_v58 = vld [vmem:[%s4695_s15 + $0x180] sm:$0xff]  }
 0xfb6   : > { %4009 = vmatpush3.bf16.msra.mxu1 %v4415_v62  ;;  %4031 = vmatpush3.bf16.msra.mxu0 %v4416_v61 }
 0xfb7   : > { %4010 = vmatprep.subr.bf16.mxu1 %v4417_v63  ;;  %4032 = vmatprep.subr.bf16.mxu0 %v4418_v1  ;;  %v4425_v1 = vld [vmem:[%s4695_s15 + $0x148] sm:$0xff]  }
 0xfba   : > { %4011 = vmatpush3.bf16.msra.mxu1 %v4419_v60  ;;  %4033 = vmatpush3.bf16.msra.mxu0 %v4420_v4  ;;  %v4426_v60 = vld [vmem:[%s4695_s15 + $0x1c8] sm:$0xff]   ;;  %v1618_v4 = vrot.slane %v4973_v9, %v1585_v10  ;;  %v1622_v10 = vrot.slane %v4973_v9, %v1589_v15  ;;  %v4430_v15 = vld [vmem:[%s4695_s15 + $0x1d0] sm:$0xff]  }
 0xfbb   : > { %4040 = vmatprep.subr.bf16.mxu1 %v4421_v5  ;;  %4062 = vmatprep.subr.bf16.mxu0 %v4422_v6 }
0x1058   : > { %v1860_v22 = vpop.f32.mrb[12].mxu1  ;;  %v1903_v23 = vpop.f32.mrb[12].mxu0 }
0x1059   : > { %v1861_v27 = vadd.f32 %v1860_v22, %v1586_v17  ;;  %v1904_v28 = vadd.f32 %v1903_v23, %v1594_v3  ;;  %v1862_v29 = vpop.f32.mrb[13].mxu1  ;;  %v1905_v30 = vpop.f32.mrb[13].mxu0 }
0x105a   : > { %v1863_v31 = vadd.f32 %v1862_v29, %v1590_v18  ;;  %v1906_v32 = vadd.f32 %v1905_v30, %v1598_v19  ;;  %v1864_v33 = vpop.f32.mrb[14].mxu1  ;;  %v1907_v24 = vpop.f32.mrb[14].mxu0 }
0x105b   : > { %v1865_v34 = vadd.f32 %v1864_v33, %v1586_v17  ;;  %v1908_v35 = vadd.f32 %v1907_v24, %v1594_v3  ;;  %v1866_v36 = vpop.f32.mrb[15].mxu1  ;;  %v1909_v37 = vpop.f32.mrb[15].mxu0  ;;  %v2170_v43 = vmax.f32 %v1861_v27, 0.0  ;;  %v2172_v44 = vmax.f32 %v1904_v28, 0.0  ;;  %v4427_v27 = vld [vmem:[%s4695_s15 + $0x108] sm:$0xff]   ;;  %v4429_v33 = vld [vmem:[%s4695_s15 + $0x150] sm:$0xff]  }
0x105c   : > { %v1867_v40 = vadd.f32 %v1866_v36, %v1590_v18  ;;  %v1910_v20 = vadd.f32 %v1909_v37, %v1598_v19  ;;  %v2171_v47 = vmax.f32 %v1863_v31, 0.0  ;;  %v2173_v48 = vmax.f32 %v1906_v32, 0.0  ;;  %v4428_v28 = vld [vmem:[%s4695_s15 + $0x188] sm:$0xff]  }
0x105d   : > { %v2186_v2 = vmax.f32 %v1865_v34, 0.0  ;;  %v2188_v0 = vmax.f32 %v1908_v35, 0.0 }
0x105e   : > { %v2187_v49 = vmax.f32 %v1867_v40, 0.0  ;;  %v2189_v46 = vmax.f32 %v1910_v20, 0.0 }
0x105f   : > { %v2202_v50 = vpack.c.bf16 %v2186_v2, %v2170_v43  ;;  %v2204_v51 = vpack.c.bf16 %v2188_v0, %v2172_v44 }
0x1060   : > { %v2203_v52 = vpack.c.bf16 %v2187_v49, %v2171_v47  ;;  %v2205_v54 = vpack.c.bf16 %v2189_v46, %v2173_v48  ;;  %v1946_v55 = vpop.f32.mrb[16].mxu1  ;;  %v1989_v56 = vpop.f32.mrb[16].mxu0  ;;  %v4433_v47 = vld [vmem:[%s4695_s15 + $0x158] sm:$0xff]  }
0x1061   : > { %v1947_v59 = vadd.f32 %v1946_v55, %v1602_v38  ;;  %v1990_v62 = vadd.f32 %v1989_v56, %v1610_v39  ;;  %v1948_v61 = vpop.f32.mrb[17].mxu1  ;;  %v1991_v63 = vpop.f32.mrb[17].mxu0  ;;  %v4434_v48 = vld [vmem:[%s4695_s15 + $0x1d8] sm:$0xff]  }
0x1062   : > { %v1949_v5 = vadd.f32 %v1948_v61, %v1606_v41  ;;  %v1992_v6 = vadd.f32 %v1991_v63, %v1614_v42  ;;  %v1950_v7 = vpop.f32.mrb[18].mxu1  ;;  %v1993_v14 = vpop.f32.mrb[18].mxu0  ;;  %3278 = vmatprep.mubr.bf16.mxu1 %v2203_v52  ;;  %3319 = vmatprep.mubr.bf16.mxu0 %v2205_v54  ;;  %v4435_v61 = vld [vmem:[%s4695_s15 + $0x118] sm:$0xff]  }
0x1063   : > { %v1951_v17 = vadd.f32 %v1950_v7, %v1602_v38  ;;  %v1994_v3 = vadd.f32 %v1993_v14, %v1610_v39  ;;  %v1952_v18 = vpop.f32.mrb[19].mxu1  ;;  %v1995_v19 = vpop.f32.mrb[19].mxu0  ;;  %3279 = vmatmul.mubr.bf16.vlgmr.msra.gmra.mrb[28].mxu1 %v2202_v50  ;;  %3320 = vmatmul.mubr.bf16.vlgmr.msra.gmra.mrb[28].mxu0 %v2204_v51  ;;  %v2174_v29 = vmax.f32 %v1947_v59, 0.0  ;;  %v2176_v30 = vmax.f32 %v1990_v62, 0.0  ;;  %v4436_v63 = vld [vmem:[%s4695_s15 + $0x198] sm:$0xff]  }
0x1064   : > { %v1953_v22 = vadd.f32 %v1952_v18, %v1606_v41  ;;  %v1996_v23 = vadd.f32 %v1995_v19, %v1614_v42  ;;  %4041 = vmatpush3.bf16.msra.mxu1 %v4423_v57  ;;  %4063 = vmatpush3.bf16.msra.mxu0 %v4424_v58  ;;  %v2175_v24 = vmax.f32 %v1949_v5, 0.0  ;;  %v2177_v34 = vmax.f32 %v1992_v6, 0.0  ;;  %v4431_v41 = vld [vmem:[%s4695_s15 + $0x110] sm:$0xff]  }
0x1065   : > { %v2190_v31 = vmax.f32 %v1951_v17, 0.0  ;;  %v2192_v32 = vmax.f32 %v1994_v3, 0.0  ;;  %4042 = vmatprep.subr.bf16.mxu1 %v4425_v1  ;;  %4064 = vmatprep.subr.bf16.mxu0 %v4426_v60  ;;  %v4432_v42 = vld [vmem:[%s4695_s15 + $0x190] sm:$0xff]   ;;  %v1634_v57 = vrot.slane %v4973_v9, %v1601_v21  ;;  %v1638_v58 = vrot.slane %v4973_v9, %v1605_v25  ;;  %v4437_v21 = vld [vmem:[%s4695_s15 + $0x160] sm:$0xff]  }
0x1066   : > { %v2191_v35 = vmax.f32 %v1953_v22, 0.0  ;;  %v2193_v36 = vmax.f32 %v1996_v23, 0.0  ;;  %v1646_v1 = vrot.slane %v4973_v9, %v1613_v26  ;;  %v4438_v25 = vld [vmem:[%s4695_s15 + $0x1e0] sm:$0xff]  }
0x1067   : > { %v5012_v37 = vpack.c.bf16 %v2190_v31, %v2174_v29  ;;  %v5014_v38 = vpack.c.bf16 %v2192_v32, %v2176_v30  ;;  %v4440_v22 = vld [vmem:[%s4695_s15 + $0x1a0] sm:$0xff]   ;;  %v4441_v29 = vld [vmem:[%s4695_s15 + $0x168] sm:$0xff]  }
0x1068   : > { %v2207_v16 = vpack.c.bf16 %v2191_v35, %v2175_v24  ;;  %v2209_v39 = vpack.c.bf16 %v2193_v36, %v2177_v34  ;;  %4043 = vmatpush3.bf16.msra.mxu1 %v4427_v27  ;;  %4065 = vmatpush3.bf16.msra.mxu0 %v4428_v28  ;;  %v2032_v40 = vpop.f32.mrb[20].mxu1  ;;  %v2075_v20 = vpop.f32.mrb[20].mxu0  ;;  %v4442_v30 = vld [vmem:[%s4695_s15 + $0x1e8] sm:$0xff]  }
0x1069   : > { %v2033_v43 = vadd.f32 %v2032_v40, %v1618_v4  ;;  %v2076_v44 = vadd.f32 %v2075_v20, %v1626_v13  ;;  %v2034_v2 = vpop.f32.mrb[21].mxu1  ;;  %v2077_v0 = vpop.f32.mrb[21].mxu0  ;;  %4044 = vmatprep.subr.bf16.mxu1 %v4429_v33  ;;  %4066 = vmatprep.subr.bf16.mxu0 %v4430_v15  ;;  %v4443_v40 = vld [vmem:[%s4695_s15 + $0x128] sm:$0xff]  }
0x106a   : > { %v2035_v49 = vadd.f32 %v2034_v2, %v1622_v10  ;;  %v2078_v46 = vadd.f32 %v2077_v0, %v1630_v12  ;;  %v2036_v50 = vpop.f32.mrb[22].mxu1  ;;  %v2079_v51 = vpop.f32.mrb[22].mxu0  ;;  %3360 = vmatprep.mubr.bf16.mxu1 %v2207_v16  ;;  %3401 = vmatprep.mubr.bf16.mxu0 %v2209_v39  ;;  %v4444_v20 = vld [vmem:[%s4695_s15 + $0x1a8] sm:$0xff]   ;;  %v4445_v2 = vld [vmem:[%s4695_s15 + $0x170] sm:$0xff]  }
0x106b   : > { %v2037_v52 = vadd.f32 %v2036_v50, %v1618_v4  ;;  %v2080_v54 = vadd.f32 %v2079_v51, %v1626_v13  ;;  %v2038_v55 = vpop.f32.mrb[23].mxu1  ;;  %v2081_v56 = vpop.f32.mrb[23].mxu0  ;;  %v2178_v60 = vmax.f32 %v2033_v43, 0.0  ;;  %v2180_v4 = vmax.f32 %v2076_v44, 0.0 }
0x106c   : > { %v2039_v59 = vadd.f32 %v2038_v55, %v1622_v10  ;;  %v2082_v62 = vadd.f32 %v2081_v56, %v1630_v12  ;;  %4045 = vmatpush3.bf16.msra.mxu1 %v4431_v41  ;;  %4067 = vmatpush3.bf16.msra.mxu0 %v4432_v42  ;;  %v2179_v7 = vmax.f32 %v2035_v49, 0.0  ;;  %v2181_v14 = vmax.f32 %v2078_v46, 0.0  ;;  %v4439_v10 = vld [vmem:[%s4695_s15 + $0x120] sm:$0xff]   ;;  %v4448_v55 = vld [vmem:[%s4695_s15 + $0x1b0] sm:$0xff]   ;;  %v4449_v56 = vld [vmem:[%s4695_s15 + $0x178] sm:$0xff]  }
0x106d   : > { %v2194_v5 = vmax.f32 %v2037_v52, 0.0  ;;  %v2196_v6 = vmax.f32 %v2080_v54, 0.0  ;;  %4046 = vmatprep.subr.bf16.mxu1 %v4433_v47  ;;  %4068 = vmatprep.subr.bf16.mxu0 %v4434_v48  ;;  %v4447_v54 = vld [vmem:[%s4695_s15 + $0x130] sm:$0xff]  }
0x106e   : > { %v2195_v13 = vmax.f32 %v2039_v59, 0.0  ;;  %v2197_v17 = vmax.f32 %v2082_v62, 0.0  ;;  %v4452_v59 = vld [vmem:[%s4695_s15 + $0x1b8] sm:$0xff]   ;;  %v4453_v62 = vld [vmem:[%s4695_s15 + $0x240] sm:$0xff]  }
0x106f   : > { %v5033_v3 = vpack.c.bf16 %v2194_v5, %v2178_v60  ;;  %v5035_v8 = vpack.c.bf16 %v2196_v6, %v2180_v4  ;;  %v4457_v60 = vld [vmem:[%s4695_s15 + $0x248] sm:$0xff]  }
0x1070   : > { %v5037_v9 = vpack.c.bf16 %v2195_v13, %v2179_v7  ;;  %v5039_v26 = vpack.c.bf16 %v2197_v17, %v2181_v14  ;;  %4047 = vmatpush3.bf16.msra.mxu1 %v4435_v61  ;;  %4069 = vmatpush3.bf16.msra.mxu0 %v4436_v63  ;;  %v2118_v18 = vpop.f32.mrb[24].mxu1  ;;  %v2161_v19 = vpop.f32.mrb[24].mxu0  ;;  %v4454_v61 = vld [vmem:[%s4695_s15 + $0x2c0] sm:$0xff]   ;;  %v4458_v4 = vld [vmem:[%s4695_s15 + $0x2c8] sm:$0xff]   ;;  %v4465_v7 = vld [vmem:[%s4695_s15 + $0x258] sm:$0xff]  }
0x1071   : > { %v2119_v23 = vadd.f32 %v2118_v18, %v1634_v57  ;;  %v2162_v27 = vadd.f32 %v2161_v19, %v4976_v11  ;;  %v2120_v28 = vpop.f32.mrb[25].mxu1  ;;  %v2163_v12 = vpop.f32.mrb[25].mxu0  ;;  %4048 = vmatprep.subr.bf16.mxu1 %v4437_v21  ;;  %4070 = vmatprep.subr.bf16.mxu0 %v4438_v25  ;;  %v4455_v63 = vld [vmem:[%s4695_s15 + $0x200] sm:$0xff]   ;;  %v4459_v5 = vld [vmem:[%s4695_s15 + $0x208] sm:$0xff]   ;;  %v4461_v21 = vld [vmem:[%s4695_s15 + $0x250] sm:$0xff]  }
0x1072   : > { %v2121_v31 = vadd.f32 %v2120_v28, %v1638_v58  ;;  %v2164_v32 = vadd.f32 %v2163_v12, %v1646_v1  ;;  %v2122_v33 = vpop.f32.mrb[26].mxu1  ;;  %v2165_v15 = vpop.f32.mrb[26].mxu0  ;;  %v4460_v6 = vld [vmem:[%s4695_s15 + $0x288] sm:$0xff]   ;;  %v4464_v25 = vld [vmem:[%s4695_s15 + $0x290] sm:$0xff]   ;;  %v4466_v14 = vld [vmem:[%s4695_s15 + $0x2d8] sm:$0xff]  }
0x1073   : > { %v2123_v24 = vadd.f32 %v2122_v33, %v1634_v57  ;;  %v2166_v34 = vadd.f32 %v2165_v15, %v4976_v11  ;;  %v2124_v35 = vpop.f32.mrb[27].mxu1  ;;  %v2167_v36 = vpop.f32.mrb[27].mxu0  ;;  %v2182_v41 = vmax.f32 %v2119_v23, 0.0  ;;  %v2184_v42 = vmax.f32 %v2162_v27, 0.0  ;;  %v4446_v11 = vld [vmem:[%s4695_s15 + $0x1f0] sm:$0xff]   ;;  %v4450_v57 = vld [vmem:[%s4695_s15 + $0x1f8] sm:$0xff]  }
0x1074   : > { %v2125_v16 = vadd.f32 %v2124_v35, %v1638_v58  ;;  %v2168_v39 = vadd.f32 %v2167_v36, %v1646_v1  ;;  %4049 = vmatpush3.bf16.msra.mxu1 %v4439_v10  ;;  %4071 = vmatpush3.bf16.msra.mxu0 %v4440_v22  ;;  %v2183_v0 = vmax.f32 %v2121_v31, 0.0  ;;  %v2185_v47 = vmax.f32 %v2164_v32, 0.0  ;;  %v4451_v58 = vld [vmem:[%s4695_s15 + $0x138] sm:$0xff]   ;;  %v4456_v1 = vld [vmem:[%s4695_s15 + $0x280] sm:$0xff]   ;;  %v4473_v10 = vld [vmem:[%s4695_s15 + $0x268] sm:$0xff]  }
0x1075   : > { %v2198_v43 = vmax.f32 %v2123_v24, 0.0  ;;  %v2200_v44 = vmax.f32 %v2166_v34, 0.0  ;;  %4050 = vmatprep.subr.bf16.mxu1 %v4441_v29  ;;  %4072 = vmatprep.subr.bf16.mxu0 %v4442_v30  ;;  %v4467_v13 = vld [vmem:[%s4695_s15 + $0x218] sm:$0xff]   ;;  %v4471_v18 = vld [vmem:[%s4695_s15 + $0x220] sm:$0xff]   ;;  %v4474_v22 = vld [vmem:[%s4695_s15 + $0x2e8] sm:$0xff]  }
0x1076   : > { %v2199_v48 = vmax.f32 %v2125_v16, 0.0  ;;  %v2201_v49 = vmax.f32 %v2168_v39, 0.0  ;;  %v4468_v17 = vld [vmem:[%s4695_s15 + $0x298] sm:$0xff]   ;;  %v4472_v19 = vld [vmem:[%s4695_s15 + $0x2a0] sm:$0xff]   ;;  %v4475_v23 = vld [vmem:[%s4695_s15 + $0x228] sm:$0xff]  }
0x1077   : > { %v5051_v46 = vpack.c.bf16 %v2198_v43, %v2182_v41  ;;  %v5053_v50 = vpack.c.bf16 %v2200_v44, %v2184_v42  ;;  %v4476_v27 = vld [vmem:[%s4695_s15 + $0x2a8] sm:$0xff]   ;;  %v4477_v28 = vld [vmem:[%s4695_s15 + $0x270] sm:$0xff]   ;;  %v4481_v31 = vld [vmem:[%s4695_s15 + $0x278] sm:$0xff]  }
0x1078   : > { %v5055_v51 = vpack.c.bf16 %v2199_v48, %v2183_v0  ;;  %v5057_v52 = vpack.c.bf16 %v2201_v49, %v2185_v47  ;;  %4051 = vmatpush3.bf16.msra.mxu1 %v4443_v40  ;;  %4073 = vmatpush3.bf16.msra.mxu0 %v4444_v20  ;;  %v4478_v12 = vld [vmem:[%s4695_s15 + $0x2f0] sm:$0xff]   ;;  %v4482_v32 = vld [vmem:[%s4695_s15 + $0x2f8] sm:$0xff]   ;;  %v4485_v24 = vld [vmem:[%s4695_s15 + $0x340] sm:$0xff]  }
0x1079   : > { %4052 = vmatprep.subr.bf16.mxu1 %v4445_v2  ;;  %4074 = vmatprep.subr.bf16.mxu0 %v4446_v11  ;;  %v4479_v29 = vld [vmem:[%s4695_s15 + $0x230] sm:$0xff]   ;;  %v4483_v33 = vld [vmem:[%s4695_s15 + $0x238] sm:$0xff]   ;;  %v4486_v34 = vld [vmem:[%s4695_s15 + $0x3c0] sm:$0xff]  }
0x107a   : > { %v4480_v30 = vld [vmem:[%s4695_s15 + $0x2b0] sm:$0xff]   ;;  %v4484_v15 = vld [vmem:[%s4695_s15 + $0x2b8] sm:$0xff]   ;;  %v4487_v35 = vld [vmem:[%s4695_s15 + $0x300] sm:$0xff]  }
0x107b   : > { %v4488_v36 = vld [vmem:[%s4695_s15 + $0x380] sm:$0xff]   ;;  %v4489_v16 = vld [vmem:[%s4695_s15 + $0x348] sm:$0xff]   ;;  %v4493_v41 = vld [vmem:[%s4695_s15 + $0x350] sm:$0xff]  }
0x107c   : > { %4053 = vmatpush3.bf16.msra.mxu1 %v4447_v54  ;;  %4075 = vmatpush3.bf16.msra.mxu0 %v4448_v55  ;;  %v4490_v39 = vld [vmem:[%s4695_s15 + $0x3c8] sm:$0xff]   ;;  %v4496_v42 = vld [vmem:[%s4695_s15 + $0x390] sm:$0xff]   ;;  %v4497_v43 = vld [vmem:[%s4695_s15 + $0x358] sm:$0xff]  }
0x107d   : > { %4054 = vmatprep.subr.bf16.mxu1 %v4449_v56  ;;  %4076 = vmatprep.subr.bf16.mxu0 %v4450_v57  ;;  %v4491_v40 = vld [vmem:[%s4695_s15 + $0x308] sm:$0xff]   ;;  %v4498_v44 = vld [vmem:[%s4695_s15 + $0x3d8] sm:$0xff]   ;;  %v4501_v0 = vld [vmem:[%s4695_s15 + $0x360] sm:$0xff]  }
0x107e   : > { %v4492_v20 = vld [vmem:[%s4695_s15 + $0x388] sm:$0xff]   ;;  %v4499_v2 = vld [vmem:[%s4695_s15 + $0x318] sm:$0xff]   ;;  %v4502_v47 = vld [vmem:[%s4695_s15 + $0x3e0] sm:$0xff]  }
0x107f   : > { %v4500_v11 = vld [vmem:[%s4695_s15 + $0x398] sm:$0xff]   ;;  %v4503_v48 = vld [vmem:[%s4695_s15 + $0x320] sm:$0xff]   ;;  %v4507_v54 = vld [vmem:[%s4695_s15 + $0x328] sm:$0xff]  }
0x1080   : > { %4055 = vmatpush3.bf16.msra.mxu1 %v4451_v58  ;;  %4077 = vmatpush3.bf16.msra.mxu0 %v4452_v59  ;;  %v4504_v49 = vld [vmem:[%s4695_s15 + $0x3a0] sm:$0xff]   ;;  %v4508_v55 = vld [vmem:[%s4695_s15 + $0x3a8] sm:$0xff]   ;;  %v4509_v56 = vld [vmem:[%s4695_s15 + $0x370] sm:$0xff]  }
0x1081   : > { %4084 = vmatprep.subr.bf16.mxu1 %v4453_v62  ;;  %4106 = vmatprep.subr.bf16.mxu0 %v4454_v61  ;;  %v4510_v57 = vld [vmem:[%s4695_s15 + $0x3f0] sm:$0xff]   ;;  %v4513_v62 = vld [vmem:[%s4695_s15 + $0x378] sm:$0xff]  }
0x1082   : > { %v4511_v58 = vld [vmem:[%s4695_s15 + $0x330] sm:$0xff]   ;;  %v4514_v61 = vld [vmem:[%s4695_s15 + $0x3f8] sm:$0xff]  }
0x1083   : > { %3361 = vmatmul.mubr.bf16.vlgmr.msra.gmra.mrb[32].mxu1 %v5012_v37  ;;  %3402 = vmatmul.mubr.bf16.vlgmr.msra.gmra.mrb[32].mxu0 %v5014_v38  ;;  %v4462_v37 = vld [vmem:[%s4695_s15 + $0x2d0] sm:$0xff]  }
0x1084   : > { %4085 = vmatpush3.bf16.msra.mxu1 %v4455_v63  ;;  %3442 = vmatprep.mubr.bf16.mxu1 %v5037_v9  ;;  %v4463_v38 = vld [vmem:[%s4695_s15 + $0x210] sm:$0xff]   ;;  %v4469_v9 = vld [vmem:[%s4695_s15 + $0x260] sm:$0xff]   ;;  %v4515_v63 = vld [vmem:[%s4695_s15 + $0x338] sm:$0xff]  }
0x1085   : > { %4107 = vmatpush3.bf16.msra.mxu0 %v4456_v1  ;;  %3483 = vmatprep.mubr.bf16.mxu0 %v5039_v26  ;;  %v4470_v26 = vld [vmem:[%s4695_s15 + $0x2e0] sm:$0xff]   ;;  %v4512_v59 = vld [vmem:[%s4695_s15 + $0x3b0] sm:$0xff]   ;;  %v4516_v1 = vld [vmem:[%s4695_s15 + $0x3b8] sm:$0xff]  }
0x1086   : > { %4086 = vmatprep.subr.bf16.mxu1 %v4457_v60  ;;  %4108 = vmatprep.subr.bf16.mxu0 %v4458_v4 }
0x1088   : > { %4087 = vmatpush3.bf16.msra.mxu1 %v4459_v5  ;;  %v3810_v5 = vld [vmem:[%s4685_s8 + $0x4d] ss:$0 sm:$0xff] }
0x1089   : > { %4109 = vmatpush3.bf16.msra.mxu0 %v4460_v6  ;;  %4088 = vmatprep.subr.bf16.mxu1 %v4461_v21 }
0x108a   : > { %4110 = vmatprep.subr.bf16.mxu0 %v4462_v37 }
0x108c   : > { %4089 = vmatpush3.bf16.msra.mxu1 %v4463_v38 }
0x108d   : > { %4111 = vmatpush3.bf16.msra.mxu0 %v4464_v25  ;;  %4090 = vmatprep.subr.bf16.mxu1 %v4465_v7 }
0x108e   : > { %4112 = vmatprep.subr.bf16.mxu0 %v4466_v14 }
0x1090   : > { %4091 = vmatpush3.bf16.msra.mxu1 %v4467_v13 }
0x1091   : > { %4113 = vmatpush3.bf16.msra.mxu0 %v4468_v17  ;;  %4092 = vmatprep.subr.bf16.mxu1 %v4469_v9 }
0x1092   : > { %4114 = vmatprep.subr.bf16.mxu0 %v4470_v26 }
0x1094   : > { %4093 = vmatpush3.bf16.msra.mxu1 %v4471_v18 }
0x1095   : > { %4115 = vmatpush3.bf16.msra.mxu0 %v4472_v19  ;;  %4094 = vmatprep.subr.bf16.mxu1 %v4473_v10 }
0x1096   : > { %4116 = vmatprep.subr.bf16.mxu0 %v4474_v22 }
0x1098   : > { %4095 = vmatpush3.bf16.msra.mxu1 %v4475_v23 }
0x1099   : > { %4117 = vmatpush3.bf16.msra.mxu0 %v4476_v27  ;;  %4096 = vmatprep.subr.bf16.mxu1 %v4477_v28 }
0x109a   : > { %4118 = vmatprep.subr.bf16.mxu0 %v4478_v12 }
0x109c   : > { %4097 = vmatpush3.bf16.msra.mxu1 %v4479_v29 }
0x109d   : > { %4119 = vmatpush3.bf16.msra.mxu0 %v4480_v30  ;;  %4098 = vmatprep.subr.bf16.mxu1 %v4481_v31 }
0x109e   : > { %4120 = vmatprep.subr.bf16.mxu0 %v4482_v32 }
0x10a0   : > { %4099 = vmatpush3.bf16.msra.mxu1 %v4483_v33 }
0x10a1   : > { %4121 = vmatpush3.bf16.msra.mxu0 %v4484_v15  ;;  %4128 = vmatprep.subr.bf16.mxu1 %v4485_v24 }
0x10a2   : > { %4150 = vmatprep.subr.bf16.mxu0 %v4486_v34 }
0x10a3   : > { %3443 = vmatmul.mubr.bf16.vlgmr.msra.gmra.mrb[36].mxu1 %v5033_v3  ;;  %v4494_v3 = vld [vmem:[%s4695_s15 + $0x3d0] sm:$0xff]  }
0x10a4   : > { %3484 = vmatmul.mubr.bf16.vlgmr.msra.gmra.mrb[36].mxu0 %v5035_v8  ;;  %4129 = vmatpush3.bf16.msra.mxu1 %v4487_v35  ;;  %v4495_v8 = vld [vmem:[%s4695_s15 + $0x310] sm:$0xff]  }
0x10a5   : > { %3524 = vmatprep.mubr.bf16.mxu1 %v5055_v51  ;;  %4151 = vmatpush3.bf16.msra.mxu0 %v4488_v36  ;;  %v4505_v51 = vld [vmem:[%s4695_s15 + $0x368] sm:$0xff]  }
0x10a6   : > { %3565 = vmatprep.mubr.bf16.mxu0 %v5057_v52  ;;  %4130 = vmatprep.subr.bf16.mxu1 %v4489_v16  ;;  %v4506_v52 = vld [vmem:[%s4695_s15 + $0x3e8] sm:$0xff]  }
0x10a7   : > { %4152 = vmatprep.subr.bf16.mxu0 %v4490_v39 }
0x10a8   : > { %4131 = vmatpush3.bf16.msra.mxu1 %v4491_v40 }
0x10a9   : > { %4153 = vmatpush3.bf16.msra.mxu0 %v4492_v20  ;;  %4132 = vmatprep.subr.bf16.mxu1 %v4493_v41 }
0x10aa   : > { %4154 = vmatprep.subr.bf16.mxu0 %v4494_v3 }
0x10ac   : > { %4133 = vmatpush3.bf16.msra.mxu1 %v4495_v8 }
0x10ad   : > { %4155 = vmatpush3.bf16.msra.mxu0 %v4496_v42  ;;  %4134 = vmatprep.subr.bf16.mxu1 %v4497_v43 }
0x10ae   : > { %4156 = vmatprep.subr.bf16.mxu0 %v4498_v44 }
0x10b0   : > { %4135 = vmatpush3.bf16.msra.mxu1 %v4499_v2 }
0x10b1   : > { %4157 = vmatpush3.bf16.msra.mxu0 %v4500_v11  ;;  %4136 = vmatprep.subr.bf16.mxu1 %v4501_v0 }
0x10b2   : > { %4158 = vmatprep.subr.bf16.mxu0 %v4502_v47 }
0x10b4   : > { %4137 = vmatpush3.bf16.msra.mxu1 %v4503_v48 }
0x10b5   : > { %4159 = vmatpush3.bf16.msra.mxu0 %v4504_v49  ;;  %4138 = vmatprep.subr.bf16.mxu1 %v4505_v51 }
0x10b6   : > { %4160 = vmatprep.subr.bf16.mxu0 %v4506_v52 }
0x10b8   : > { %4139 = vmatpush3.bf16.msra.mxu1 %v4507_v54 }
0x10b9   : > { %4161 = vmatpush3.bf16.msra.mxu0 %v4508_v55  ;;  %4140 = vmatprep.subr.bf16.mxu1 %v4509_v56 }
0x10ba   : > { %4162 = vmatprep.subr.bf16.mxu0 %v4510_v57 }
0x10bc   : > { %4141 = vmatpush3.bf16.msra.mxu1 %v4511_v58 }
0x10bd   : > { %4163 = vmatpush3.bf16.msra.mxu0 %v4512_v59  ;;  %4142 = vmatprep.subr.bf16.mxu1 %v4513_v62 }
0x10be   : > { %4164 = vmatprep.subr.bf16.mxu0 %v4514_v61 }
0x10c0   : > { %4143 = vmatpush3.bf16.msra.mxu1 %v4515_v63 }
0x10c1   : > { %4165 = vmatpush3.bf16.msra.mxu0 %v4516_v1 }
0x10c3   : > { %3525 = vmatmul.mubr.bf16.vlgmr.msra.gmra.mrb[40].mxu1 %v5051_v46 }
0x10c4   : > { %3566 = vmatmul.mubr.bf16.vlgmr.msra.gmra.mrb[40].mxu0 %v5053_v50 }
0x1136   : > { %v4012_v60 = vpop.f32.mrb[28].mxu1  ;;  %v4034_v4 = vpop.f32.mrb[28].mxu0 }
0x1137   : > { %v4013_v6 = vpop.f32.mrb[29].mxu1  ;;  %v4035_v21 = vpop.f32.mrb[29].mxu0 }
0x1138   : > { %v4014_v37 = vadd.f32 %v4013_v6, %v4012_v60  ;;  %v4036_v38 = vadd.f32 %v4035_v21, %v4034_v4  ;;  %v4015_v25 = vpop.f32.mrb[30].mxu1  ;;  %v4037_v7 = vpop.f32.mrb[30].mxu0 }
0x1139   : > { %v4016_v14 = vpop.f32.mrb[31].mxu1  ;;  %v4038_v13 = vpop.f32.mrb[31].mxu0 }
0x113a   : > { %v3281_v17 = vadd.f32 %v4014_v37, %v3810_v5  ;;  %v4017_v9 = vadd.f32 %v4016_v14, %v4015_v25  ;;  %v4039_v26 = vadd.f32 %v4038_v13, %v4037_v7 }
0x113c   : > { %v3322_v18 = vadd.f32 %v4036_v38, %v3281_v17  ;;  %v3284_v19 = vadd.f32 %v4017_v9, %v3810_v5 }
0x113e   : > { %v3325_v10 = vadd.f32 %v4039_v26, %v3284_v19 }
0x1156   : > { %v4056_v46 = vpop.f32.mrb[32].mxu1  ;;  %v4078_v22 = vpop.f32.mrb[32].mxu0 }
0x1157   : > { %v4057_v50 = vpop.f32.mrb[33].mxu1  ;;  %v4079_v23 = vpop.f32.mrb[33].mxu0 }
0x1158   : > { %v4058_v27 = vadd.f32 %v4057_v50, %v4056_v46  ;;  %v4080_v28 = vadd.f32 %v4079_v23, %v4078_v22  ;;  %v4059_v12 = vpop.f32.mrb[34].mxu1  ;;  %v4081_v29 = vpop.f32.mrb[34].mxu0 }
0x1159   : > { %v4060_v30 = vpop.f32.mrb[35].mxu1  ;;  %v4082_v31 = vpop.f32.mrb[35].mxu0 }
0x115a   : > { %v3363_v32 = vadd.f32 %v4058_v27, %v3322_v18  ;;  %v4061_v33 = vadd.f32 %v4060_v30, %v4059_v12  ;;  %v4083_v15 = vadd.f32 %v4082_v31, %v4081_v29 }
0x115c   : > { %v3404_v24 = vadd.f32 %v4080_v28, %v3363_v32  ;;  %v3366_v34 = vadd.f32 %v4061_v33, %v3325_v10 }
0x115e   : > { %v3407_v35 = vadd.f32 %v4083_v15, %v3366_v34  ;;  %v3940_v34 = vld [vmem:[%s5185_s1 + $0x38] ss:$0 sm:$0xff] (!%p3939_p5) }
0x1176   : > { %v4100_v36 = vpop.f32.mrb[36].mxu1 }
0x1177   : > { %v4122_v16 = vpop.f32.mrb[36].mxu0  ;;  %v4101_v39 = vpop.f32.mrb[37].mxu1 }
0x1178   : > { %v4102_v40 = vadd.f32 %v4101_v39, %v4100_v36  ;;  %v4123_v20 = vpop.f32.mrb[37].mxu0  ;;  %v4103_v41 = vpop.f32.mrb[38].mxu1 }
0x1179   : > { %v4124_v3 = vadd.f32 %v4123_v20, %v4122_v16  ;;  %v4125_v8 = vpop.f32.mrb[38].mxu0  ;;  %v4104_v42 = vpop.f32.mrb[39].mxu1  ;;  %v3941_v16 = vld [vmem:[%s5185_s1 + $0x39] ss:$0 sm:$0xff] (!%p3939_p5) }
0x117a   : > { %v3445_v43 = vadd.f32 %v4102_v40, %v3404_v24  ;;  %v4105_v44 = vadd.f32 %v4104_v42, %v4103_v41  ;;  %v4126_v2 = vpop.f32.mrb[39].mxu0 }
0x117b   : > { %v4127_v11 = vadd.f32 %v4126_v2, %v4125_v8 }
0x117c   : > { %v3486_v0 = vadd.f32 %v4124_v3, %v3445_v43  ;;  %v3448_v47 = vadd.f32 %v4105_v44, %v3407_v35 }
0x117e   : > { %v3489_v48 = vadd.f32 %v4127_v11, %v3448_v47 }
0x1196   : > { %v4144_v49 = vpop.f32.mrb[40].mxu1 }
0x1197   : > { %v4166_v51 = vpop.f32.mrb[40].mxu0  ;;  %v4145_v52 = vpop.f32.mrb[41].mxu1 }
0x1198   : > { %v4146_v54 = vadd.f32 %v4145_v52, %v4144_v49  ;;  %v4167_v55 = vpop.f32.mrb[41].mxu0  ;;  %v4147_v56 = vpop.f32.mrb[42].mxu1 }
0x1199   : > { %v4168_v57 = vadd.f32 %v4167_v55, %v4166_v51  ;;  %v4169_v58 = vpop.f32.mrb[42].mxu0  ;;  %v4148_v59 = vpop.f32.mrb[43].mxu1 }
0x119a   : > { %v3527_v62 = vadd.f32 %v4146_v54, %v3486_v0  ;;  %v4149_v61 = vadd.f32 %v4148_v59, %v4147_v56  ;;  %v4170_v63 = vpop.f32.mrb[43].mxu0 }
0x119b   : > { %v4171_v1 = vadd.f32 %v4170_v63, %v4169_v58 }
0x119c   : > { %v3568_v60 = vadd.f32 %v4168_v57, %v3527_v62  ;;  %v3530_v4 = vadd.f32 %v4149_v61, %v3489_v48  ;;  %3581 = sbr.rel (%p3939_p5) target bundleno = 4843 (0x12eb), region = 52 }
0x119e   : > { %v3574_v5 = vadd.f32 %v3568_v60, %v4855_v45  ;;  %v3571_v6 = vadd.f32 %v4171_v1, %v3530_v4 }
0x11a0   : > { %3576 = vst.msk [vmem:[#allocation2] sm:$0xff] %vm419_vm2, %v3574_v5  ;;  %v3575_v21 = vadd.f32 %v3571_v6, %v4853_v53  ;;  %v3584_v37 = vsel (!%p3939_p5), %vm419_vm2, %v3574_v5, 0.0 }
0x11a1   : > { %3585 = vadd.xlane.f32.xlu0 (!%p3939_p5), %v3584_v37 }
0x11a2   : > { %3577 = vst.msk [vmem:[#allocation2 + $0x8] sm:$0xff] %vm419_vm2, %v3575_v21  ;;  %v3587_v38 = vsel (!%p3939_p5), %vm419_vm2, %v3575_v21, 0.0 }
0x11a5   : > { %3588 = vadd.xlane.f32.xlu0 %v3587_v38 }
0x122e   : > { %v3586_v25 = vpop.xlane.xlu0 %3585 }
0x122f   : > { %v3590_v7 = vmul.f32 0.03125, %v3586_v25 }
0x1231   : > { %v3592_v14 = vsub.f32 %v3574_v5, %v3590_v7 }
0x1232   : > { %v3589_v45 = vpop.xlane.xlu0 %3588 }
0x1233   : > { %v3591_v13 = vmul.f32 0.03125, %v3589_v45  ;;  %v3594_v17 = vmul.f32 %v3592_v14, %v3592_v14  ;;  %v3608_v35 = vmul.f32 %v3940_v34, %v3592_v14 }
0x1235   : > { %v3593_v9 = vsub.f32 %v3575_v21, %v3591_v13  ;;  %v3596_v53 = vsel %vm419_vm2, %v3594_v17, 0.0 }
0x1236   : > { %3597 = vadd.xlane.f32.xlu1 %v3596_v53 }
0x1237   : > { %v3595_v26 = vmul.f32 %v3593_v9, %v3593_v9  ;;  %v3609_v40 = vmul.f32 %v3940_v34, %v3593_v9 }
0x1239   : > { %v3599_v18 = vsel %vm419_vm2, %v3595_v26, 0.0 }
0x123a   : > { %3600 = vadd.xlane.f32.xlu1 %v3599_v18 }
0x12c3   : > { %v3598_v19 = vpop.xlane.xlu1 %3597 }
0x12c4   : > { %v3602_v10 = vmul.f32 0.032258064, %v3598_v19 }
0x12c6   : > { %4567 = vrsqrt.f32 %v3602_v10  ;;  %vm3612_vm15 = vcmp.eq.f32.partialorder %v3602_v10, inf  ;;  %v3615_v27 = vand.u32 2147483648, %v3602_v10  ;;  %vm3614_vm0 = vcmp.eq.f32.partialorder %v3602_v10, 0.0 }
0x12c7   : > { %v3601_v46 = vpop.xlane.xlu1 %3600 }
0x12c8   : > { %v3603_v22 = vmul.f32 0.032258064, %v3601_v46 }
0x12ca   : > { %4569 = vrsqrt.f32 %v3603_v22  ;;  %vm3619_vm1 = vcmp.eq.f32.partialorder %v3603_v22, inf  ;;  %v3622_v32 = vand.u32 2147483648, %v3603_v22  ;;  %vm3621_vm3 = vcmp.eq.f32.partialorder %v3603_v22, 0.0 }
0x12d0   : > { %v4568_v50 = vpop.eup %4567 }
0x12d1   : > { %v3611_v23 = vmul.f32 %v4568_v50, %v3602_v10 }
0x12d3   : > { %v3613_v28 = vsel %vm3612_vm15, %v3602_v10, %v3611_v23 }
0x12d4   : > { %v4570_v12 = vpop.eup %4569  ;;  %v3616_v29 = vsel %vm3614_vm0, %v3615_v27, %v3613_v28 }
0x12d5   : > { %v3624_v30 = vadd.f32 1e-06, %v3616_v29  ;;  %v3618_v31 = vmul.f32 %v4570_v12, %v3603_v22 }
0x12d7   : > { %4571 = vrcp.f32 %v3624_v30  ;;  %v3620_v33 = vsel %vm3619_vm1, %v3603_v22, %v3618_v31 }
0x12d8   : > { %v3623_v15 = vsel %vm3621_vm3, %v3622_v32, %v3620_v33 }
0x12d9   : > { %v3625_v24 = vadd.f32 1e-06, %v3623_v15 }
0x12db   : > { %4573 = vrcp.f32 %v3625_v24 }
0x12e1   : > { %v4572_v36 = vpop.eup %4571 }
0x12e2   : > { %v3627_v39 = vmul.f32 %v4572_v36, %v3608_v35 }
0x12e4   : > { %v3634_v20 = vadd.f32 %v3941_v16, %v3627_v39 }
0x12e5   : > { %v4574_v41 = vpop.eup %4573 }
0x12e6   : > { %3636 = vst.msk [vmem:[#allocation3] sm:$0xff] %vm419_vm2, %v3634_v20  ;;  %v3629_v3 = vmul.f32 %v4574_v41, %v3609_v40 }
0x12e8   : > { %v3635_v8 = vadd.f32 %v3941_v16, %v3629_v3 }
0x12ea   : > { %3637 = vst.msk [vmem:[#allocation3 + $0x8] sm:$0xff] %vm419_vm2, %v3635_v8 }
0x12eb PF: > { %p4322_p6 = scmp.eq.s32.totalorder %s4671_s22, 1  ;;  %s4628_s10 = smov [#allocation3]  }
0x12ec   : > { %s3644_s12 = sshll.u32 %s4628_s10, 4  ;;  %s3645_s12 = int_to_ptr.vmem [resolvable:$true] %s3644_s12 }
0x12ed   : > { %s4575_s13 = scalar_lea.vmem %s3645_s12, 256  ;;  %p4582_p10 = scmp.lt.s32.totalorder %s3645_s12, %s3645_s12 }
0x12ee   : > { %p4576_p7 = scmp.ne.s32.totalorder %s3645_s12, %s4575_s13  ;;  %p4583_p11 = scmp.lt.s32.totalorder %s4575_s13, %s4575_s13 }
0x12f0   : > { %p4577_p8 = pnand %p4576_p7, %p4322_p6  ;;  %p4584_p12 = por %p4583_p11, %p4582_p10 }
0x12f2   : > { %p4578_p9 = pneg %p4577_p8 }
0x12f4   : > { %p4585_p13 = pnand %p4584_p12, %p4578_p9 }
0x12f6   : > { %4588 = shalt.err (!%p4585_p13)
}
0x12f7   : > { %s4589_s17 = scalar_lea.hbm %s5190_s6, 256 }
0x12f8   : > { %p4590_p0 = scmp.ne.s32.totalorder %s5190_s6, %s4589_s17  ;;  %p4595_p3 = scmp.lt.u32.totalorder %s4589_s17, %s5190_s6 }
0x12fa   : > { %p4591_p1 = pnand %p4590_p0, %p4322_p6 }
0x12fc   : > { %p4592_p2 = pneg %p4591_p1 }
0x12fe   : > { %p4597_p4 = pnand %p4595_p3, %p4592_p2 }
0x1300   : > { %4600 = shalt.err (!%p4597_p4)
}
0x1301   : > { %s4629_s23 = smov 128  }
0x1302   : > { %4319 = dma.vmem_to_hbm [thread:$0]  (%p4322_p6), %s3645_s12, 256, %s5190_s6, [#allocation4], %s4629_s23, %s4629_s23, %s4624_s30  }
0x1303   : > { %4606 = dma.done.wait (%p4322_p6), [#allocation4], 256  }
0x1304   : > { %4608 = vsyncadd (%p4322_p6), [#allocation4], 4294967040 }
0x1305 PF: > { %s17_s21 = sadd.s32 1, %s4611_s21  }
0x1306   : > { %p14_p5 = scmp.ge.s32.totalorder %s17_s21, 4  }
0x1308   :  { %16 = sbr.rel (!%p14_p5) target bundleno = 1 (0x1), region = 88 }
0x130f   :  { %3660 = vsyncpa [#allocation4], 1 }
0x1310   :  { %3662 = vsyncpa [#allocation4 + $0x1], 1 }

</bundles_post_ra>
